<compile_context>
chip_gen: v7x
topology: tpu7x:2x2x1
jax: 0.10.0
libtpu: 0.0.40
codegen_flags: <defaults>
</compile_context>

<pallas_src>
import functools
import math

import jax
import jax.numpy as jnp
import numpy as np
from jax import lax
from jax.experimental import pallas as pl
from jax.experimental.pallas import tpu as pltpu


# ---------------------------------------------------------------------------
# Generation-aware defaults (v7x: 64 MiB VMEM per TC; v5e/v6e: 128 MiB).
# ---------------------------------------------------------------------------
def _vmem_capacity_bytes():
    try:
        info = pltpu.get_tpu_info()
        for attr in ("vmem_capacity_bytes", "vmem_size_bytes", "vmem_bytes"):
            v = getattr(info, attr, None)
            if v:
                return int(v)
    except Exception:
        pass
    return 128 * 1024 * 1024


_VMEM_CAP = _vmem_capacity_bytes()
_SMALL_VMEM = _VMEM_CAP <= 80 * 1024 * 1024            # v7x-class chips
_VMEM_LIMIT = (28 if _SMALL_VMEM else 64) * 1024 * 1024
_MM_TM, _MM_TN, _MM_TK = (256, 256, 256) if _SMALL_VMEM else (512, 512, 512)
_ATT_TQ, _ATT_TKV = (256, 256) if _SMALL_VMEM else (256, 512)


def _pick_tile(dim, target, quantum):
    """Largest multiple of `quantum` that divides `dim`, capped at `target`.

    Falls back to the full dimension only when no aligned divisor exists
    (tiny or ragged dims, where the full extent is the only legal block).
    """
    best = 0
    cand = quantum
    hi = min(target, dim)
    while cand <= hi:
        if dim % cand == 0:
            best = cand
        cand += quantum
    return best if best > 0 else dim
    # TODO(synk): dims that are not a multiple of `quantum` still fall back to
    # the full extent; pad + mask in the wrapper if such ragged shapes show up.


# ---------------------------------------------------------------------------
# Tiled matmul kernels (used for both projections).  bf16-ready MXU operands,
# f32 accumulation.  Three variants: single-K (no accumulator), f32-output
# in-place accumulation (no scratch), bf16-output with f32 scratch.
# ---------------------------------------------------------------------------
def _mm_kernel_single(x_ref, w_ref, o_ref):
    o_ref[...] = jnp.dot(x_ref[...], w_ref[...],
                         preferred_element_type=jnp.float32).astype(o_ref.dtype)


def _mm_kernel_acc_inplace(x_ref, w_ref, o_ref):
    # K-reduction accumulating directly into the f32 output block (no scratch).
    @pl.when(pl.program_id(2) == 0)
    def _():
        o_ref[...] = jnp.zeros(o_ref.shape, o_ref.dtype)

    o_ref[...] += jnp.dot(x_ref[...], w_ref[...],
                          preferred_element_type=jnp.float32)


def _mm_kernel_acc_scratch(x_ref, w_ref, o_ref, acc_ref):
    @pl.when(pl.program_id(2) == 0)
    def _():
        acc_ref[...] = jnp.zeros(acc_ref.shape, acc_ref.dtype)

    acc_ref[...] += jnp.dot(x_ref[...], w_ref[...],
                            preferred_element_type=jnp.float32)

    @pl.when(pl.program_id(2) == pl.num_programs(2) - 1)
    def _():
        o_ref[...] = acc_ref[...].astype(o_ref.dtype)


def _matmul(x, w, *, out_dtype=None, tm=None, tn=None, tk=None):
    """Tiled y = x @ w with f32 accumulation (MXU operands in x/w's dtype)."""
    M, K = x.shape
    K2, N = w.shape
    assert K == K2
    out_dtype = out_dtype if out_dtype is not None else x.dtype
    tm = _pick_tile(M, tm or _MM_TM, 8)
    tn = _pick_tile(N, tn or _MM_TN, 128)
    tk = _pick_tile(K, tk or _MM_TK, 128)
    gm, gn, gk = M // tm, N // tn, K // tk
    out_shape = jax.ShapeDtypeStruct((M, N), out_dtype)

    if gk == 1:
        return pl.pallas_call(
            _mm_kernel_single,
            out_shape=out_shape,
            grid_spec=pltpu.PrefetchScalarGridSpec(
                num_scalar_prefetch=0,
                grid=(gm, gn),
                in_specs=[pl.BlockSpec((tm, tk), lambda i, j: (i, 0)),
                          pl.BlockSpec((tk, tn), lambda i, j: (0, j))],
                out_specs=pl.BlockSpec((tm, tn), lambda i, j: (i, j))),
            compiler_params=pltpu.CompilerParams(
                dimension_semantics=("parallel", "parallel"),
                vmem_limit_bytes=_VMEM_LIMIT),
        )(x, w)

    f32_out = np.dtype(out_dtype) == np.dtype(jnp.float32)
    kernel = _mm_kernel_acc_inplace if f32_out else _mm_kernel_acc_scratch
    scratch = [] if f32_out else [pltpu.VMEM((tm, tn), jnp.float32)]
    return pl.pallas_call(
        kernel,
        out_shape=out_shape,
        grid_spec=pltpu.PrefetchScalarGridSpec(
            num_scalar_prefetch=0,
            grid=(gm, gn, gk),
            in_specs=[pl.BlockSpec((tm, tk), lambda i, j, k: (i, k)),
                      pl.BlockSpec((tk, tn), lambda i, j, k: (k, j))],
            out_specs=pl.BlockSpec((tm, tn), lambda i, j, k: (i, j)),
            scratch_shapes=scratch),
        compiler_params=pltpu.CompilerParams(
            dimension_semantics=("parallel", "parallel", "arbitrary"),
            vmem_limit_bytes=_VMEM_LIMIT),
    )(x, w)


# ---------------------------------------------------------------------------
# Flash attention.  Grid = (batch, head-group, q-tiles, kv-tiles); the KV axis
# is the innermost reduction with an online softmax held in VMEM scratch.
# q/k/v blocks are column windows of the qkv-projection buffer (Q | K | V,
# heads minor within each), so no transpose/reshape HBM traffic is needed on
# either side of the kernel; the output is a lane-dense [tq, hg*d_k] store.
# ---------------------------------------------------------------------------
def _head_group(num_heads, d_k):
    """Heads per block so the fused column width hg*d_k is a 128-multiple."""
    if d_k % 128 == 0:
        return 1
    g = 128 // math.gcd(d_k, 128)
    if g <= num_heads and num_heads % g == 0:
        return g
    return None


def _flash_attn_kernel(q_ref, k_ref, v_ref, o_ref, m_sc, l_sc, acc_sc, *,
                       scale, hg, d_k, approx_recip):
    ki = pl.program_id(3)

    @pl.when(ki == 0)
    def _():
        m_sc[...] = jnp.full(m_sc.shape, -jnp.inf, dtype=m_sc.dtype)
        l_sc[...] = jnp.zeros(l_sc.shape, l_sc.dtype)
        acc_sc[...] = jnp.zeros(acc_sc.shape, acc_sc.dtype)

    q = q_ref[...]                                  # [tq,  hg*d_k]
    k = k_ref[...]                                  # [tkv, hg*d_k]
    v = v_ref[...]                                  # [tkv, hg*d_k]

    # Static unroll over the heads of this group: all ops stay 2-D.
    for h in range(hg):
        lo = h * d_k
        q_h = q[:, lo:lo + d_k]
        k_h = k[:, lo:lo + d_k]
        v_h = v[:, lo:lo + d_k]

        # QK^T: contract d_k -> [tq, tkv] in f32.
        s = lax.dot_general(q_h, k_h, (((1,), (1,)), ((), ())),
                            preferred_element_type=jnp.float32) * scale

        m_prev = m_sc[h]                                           # [tq, 1]
        m_new = jnp.maximum(m_prev, jnp.max(s, axis=-1, keepdims=True))
        alpha = jnp.exp(m_prev - m_new)
        # NOTE: exp stays f32 for accuracy; on v6e/v7x a bf16 exp would double
        # EUP throughput if the EUP slot ever becomes the critical unit.
        p = jnp.exp(s - m_new)                                     # [tq, tkv]

        l_sc[h] = alpha * l_sc[h] + jnp.sum(p, axis=-1, keepdims=True)
        acc_sc[h] = alpha * acc_sc[h] + jnp.dot(
            p.astype(v_h.dtype), v_h, preferred_element_type=jnp.float32)
        m_sc[h] = m_new

    @pl.when(ki == pl.num_programs(3) - 1)
    def _():
        parts = []
        for h in range(hg):
            inv_l = pl.reciprocal(l_sc[h], approx=approx_recip)    # EUP slot
            parts.append(acc_sc[h] * inv_l)
        ctx = parts[0] if hg == 1 else jnp.concatenate(parts, axis=-1)
        o_ref[...] = ctx.astype(o_ref.dtype)        # single lane-dense store


def _flash_attention(qkv, num_heads, *, out_dtype, tq=None, tkv=None):
    """qkv: [B, S, 3*D] (Q | K | V column blocks, heads minor within each).

    Returns ctx: [B, S, D] with heads already interleaved for the output
    projection (no XLA transpose on either side of the kernel).
    """
    B, S, threeD = qkv.shape
    D = threeD // 3
    H = num_heads
    d_k = D // H
    scale = 1.0 / math.sqrt(d_k)

    tq = _pick_tile(S, tq or _ATT_TQ, 8)
    tkv = _pick_tile(S, tkv or _ATT_TKV, 8)

    hg = _head_group(H, d_k)
    if hg is not None:
        # Main path: q/k/v head-group column blocks read directly from qkv.
        nG = H // hg
        cw = hg * d_k
        q_in = k_in = v_in = qkv
        q_map = lambda b, g, qi, ki: (b, qi, g)
        k_map = lambda b, g, qi, ki: (b, ki, nG + g)
        v_map = lambda b, g, qi, ki: (b, ki, 2 * nG + g)
    else:
        # Tiny / irregular head configs: split q/k/v once in XLA and carry all
        # heads in one full-width block (bandwidth is irrelevant at this size).
        hg, nG, cw = H, 1, D
        q_in, k_in, v_in = jnp.split(qkv, 3, axis=-1)
        q_map = lambda b, g, qi, ki: (b, qi, 0)
        k_map = lambda b, g, qi, ki: (b, ki, 0)
        v_map = lambda b, g, qi, ki: (b, ki, 0)
    o_map = q_map   # same row/column tiling as the q block, on [B, S, D]

    grid = (B, nG, S // tq, S // tkv)
    kernel = functools.partial(
        _flash_attn_kernel, scale=scale, hg=hg, d_k=d_k,
        approx_recip=np.dtype(out_dtype) != np.dtype(jnp.float32))

    # NOTE: m/l scratch keeps a trailing dim of 1 (lane-padded to 128) — a few
    # hundred KiB, accepted for simplicity.  If K/V DMA is exposed on v5e, add
    # pipeline_mode=pl.Buffered(3) to the k/v BlockSpecs.
    return pl.pallas_call(
        kernel,
        out_shape=jax.ShapeDtypeStruct((B, S, D), out_dtype),
        grid_spec=pltpu.PrefetchScalarGridSpec(
            num_scalar_prefetch=0,
            grid=grid,
            in_specs=[
                pl.BlockSpec((None, tq, cw), q_map),
                pl.BlockSpec((None, tkv, cw), k_map),
                pl.BlockSpec((None, tkv, cw), v_map),
            ],
            out_specs=pl.BlockSpec((None, tq, cw), o_map),
            scratch_shapes=[
                pltpu.VMEM((hg, tq, 1), jnp.float32),     # running max
                pltpu.VMEM((hg, tq, 1), jnp.float32),     # running sum
                pltpu.VMEM((hg, tq, d_k), jnp.float32),   # running context
            ]),
        compiler_params=pltpu.CompilerParams(
            dimension_semantics=("parallel", "parallel", "parallel", "arbitrary"),
            vmem_limit_bytes=_VMEM_LIMIT),
    )(q_in, k_in, v_in)


# ---------------------------------------------------------------------------
# Full forward:  qkv proj -> attention -> output proj.
# ---------------------------------------------------------------------------
def multi_head_attention(x, w_qkv, w_o, num_heads, *, compute_dtype=jnp.bfloat16):
    """x: [B, S, D], w_qkv: [D, 3D], w_o: [D, D] -> [B, S, D] (x.dtype)."""
    B, S, D = x.shape
    assert D % num_heads == 0
    out_dtype = x.dtype

    # MXU operands in compute_dtype (bf16 by default), f32 accumulation.
    x2d = x.astype(compute_dtype).reshape(B * S, D)
    w_qkv_c = w_qkv.astype(compute_dtype)
    w_o_c = w_o.astype(compute_dtype)

    # 1) QKV projection -> [B*S, 3D]  (Q | K | V column blocks, heads minor).
    qkv2d = _matmul(x2d, w_qkv_c, out_dtype=compute_dtype)

    # 2) Flash attention reads q/k/v straight out of qkv (free reshape only)
    #    and writes a lane-dense [B, S, D] context buffer.
    ctx = _flash_attention(qkv2d.reshape(B, S, 3 * D), num_heads,
                           out_dtype=compute_dtype)

    # 3) Output projection back to the input dtype (f32 accumulation).
    out2d = _matmul(ctx.reshape(B * S, D), w_o_c, out_dtype=out_dtype)
    return out2d.reshape(B, S, D)

    # TODO(synk): attention mask, dropout (train mode), and kv_cache
    # (use_cache=True) branches are not implemented (eval-mode path only).


def _reference(x, w_qkv, w_o, num_heads):
    # Pure-JAX f32 reference mirroring the PyTorch forward (eval, no mask).
    B, S, D = x.shape
    d_k = D // num_heads
    with jax.default_matmul_precision("float32"):
        qkv = x @ w_qkv
        q, k, v = jnp.split(qkv, 3, axis=-1)

        def heads(t):
            return t.reshape(B, S, num_heads, d_k).transpose(0, 2, 1, 3)

        q, k, v = heads(q), heads(k), heads(v)
        scores = (q @ k.transpose(0, 1, 3, 2)) / math.sqrt(d_k)
        probs = jax.nn.softmax(scores, axis=-1)
        out = probs @ v
        out = out.transpose(0, 2, 1, 3).reshape(B, S, D)
        return out @ w_o


if __name__ == "__main__":
    mha = jax.jit(multi_head_attention,
                  static_argnames=("num_heads", "compute_dtype"))

    # ---- Test 1: tiny module-consistent shapes, f32 compute path. ----------
    B, S, D, H = 2, 8, 32, 4
    k0, k1, k2 = jax.random.split(jax.random.PRNGKey(0), 3)
    x = jax.random.normal(k0, (B, S, D), dtype=jnp.float32)
    w_qkv = jax.random.normal(k1, (D, 3 * D), dtype=jnp.float32) / math.sqrt(D)
    w_o = jax.random.normal(k2, (D, D), dtype=jnp.float32) / math.sqrt(D)

    out = jax.block_until_ready(
        mha(x, w_qkv, w_o, num_heads=H, compute_dtype=jnp.float32))
    ref = _reference(x, w_qkv, w_o, H)
    assert out.shape == (B, S, D)
    assert jnp.allclose(out, ref, atol=1e-3, rtol=1e-3), "tiny f32 path mismatch"

    # ---- Test 2: tiled path (grid > 1 on every attention axis), bf16 MXU. --
    B2, S2, D2, H2 = 2, 1024, 256, 4          # d_k = 64 -> head groups of 2
    k0, k1, k2 = jax.random.split(jax.random.PRNGKey(1), 3)
    x2 = jax.random.normal(k0, (B2, S2, D2), dtype=jnp.float32)
    w_qkv2 = jax.random.normal(k1, (D2, 3 * D2), dtype=jnp.float32) / math.sqrt(D2)
    w_o2 = jax.random.normal(k2, (D2, D2), dtype=jnp.float32) / math.sqrt(D2)

    out2 = jax.block_until_ready(
        mha(x2, w_qkv2, w_o2, num_heads=H2, compute_dtype=jnp.bfloat16))
    ref2 = _reference(x2, w_qkv2, w_o2, H2)
    rel = jnp.linalg.norm(out2 - ref2) / jnp.linalg.norm(ref2)
    assert out2.shape == (B2, S2, D2)
    assert rel < 5e-2, f"tiled bf16 path mismatch (rel err {rel})"

    # ---- Test 3: matmul K-reduction (accumulator) paths. -------------------
    ka, kb = jax.random.split(jax.random.PRNGKey(2))
    a = jax.random.normal(ka, (512, 1024), dtype=jnp.bfloat16)
    b = jax.random.normal(kb, (1024, 256), dtype=jnp.bfloat16)
    c_ref = jnp.dot(a.astype(jnp.float32), b.astype(jnp.float32),
                    precision=jax.lax.Precision.HIGHEST)
    c32 = _matmul(a, b, out_dtype=jnp.float32, tk=256)      # in-place f32 acc
    cbf = _matmul(a, b, out_dtype=jnp.bfloat16, tk=256)     # scratch acc
    jax.block_until_ready((c32, cbf))
    assert jnp.linalg.norm(c32 - c_ref) / jnp.linalg.norm(c_ref) < 1e-2
    assert (jnp.linalg.norm(cbf.astype(jnp.float32) - c_ref)
            / jnp.linalg.norm(c_ref)) < 2e-2

    print("KERNEL_OK")
</pallas_src>

<mosaic_0001>
module attributes {stable_mosaic.version = 11 : i64} {
  func.func @_mm_kernel_single(%arg0: i32, %arg1: i32, %arg2: memref<16x32xf32, #tpu.memory_space<vmem>>, %arg3: memref<32x32xf32, #tpu.memory_space<vmem>>, %arg4: memref<16x32xf32, #tpu.memory_space<vmem>>) attributes {dimension_semantics = [#tpu.dimension_semantics<parallel>, #tpu.dimension_semantics<parallel>], iteration_bounds = array<i64: 1, 1>, scalar_prefetch = 0 : i64, scratch_operands = 0 : i64, tpu.core_type = #tpu.core_type<tc>, window_params = [{transform_indices = @transform_0, window_bounds = array<i64: 16, 32>}, {transform_indices = @transform_1, window_bounds = array<i64: 32, 32>}, {transform_indices = @transform_2, window_bounds = array<i64: 16, 32>}]} {
    %c0 = arith.constant 0 : index
    %c0_0 = arith.constant 0 : index
    %0 = vector.load %arg2[%c0, %c0_0] : memref<16x32xf32, #tpu.memory_space<vmem>>, vector<16x32xf32>
    %c0_1 = arith.constant 0 : index
    %c0_2 = arith.constant 0 : index
    %1 = vector.load %arg3[%c0_1, %c0_2] : memref<32x32xf32, #tpu.memory_space<vmem>>, vector<32x32xf32>
    %cst = arith.constant dense<0.000000e+00> : vector<16x32xf32>
    %2 = tpu.matmul %0, %1, %cst {dimension_numbers = #tpu.dot_dimension_numbers<[1], [0], [0], [1], [0, 0, 1, 1], [], []>} : vector<16x32xf32>, vector<32x32xf32>, vector<16x32xf32> -> vector<16x32xf32>
    %c0_3 = arith.constant 0 : index
    %c0_4 = arith.constant 0 : index
    %3 = vector.load %arg4[%c0_3, %c0_4] : memref<16x32xf32, #tpu.memory_space<vmem>>, vector<16x32xf32>
    tpu.vector_store %arg4[%c0_3, %c0_4], %2 {strides = array<i32>} : memref<16x32xf32, #tpu.memory_space<vmem>>, vector<16x32xf32>,
    return
  }
  func.func @transform_0(%arg0: i32, %arg1: i32) -> (i32, i32) {
    %c0_i32 = arith.constant 0 : i32
    %c0_i32_0 = arith.constant 0 : i32
    return %arg0, %c0_i32 : i32, i32
  }
  func.func @transform_1(%arg0: i32, %arg1: i32) -> (i32, i32) {
    %c0_i32 = arith.constant 0 : i32
    %c0_i32_0 = arith.constant 0 : i32
    return %c0_i32, %arg1 : i32, i32
  }
  func.func @transform_2(%arg0: i32, %arg1: i32) -> (i32, i32) {
    %c0_i32 = arith.constant 0 : i32
    return %arg0, %arg1 : i32, i32
  }
}

module attributes {stable_mosaic.version = 11 : i64} {
  func.func @_mm_kernel_single(%arg0: i32, %arg1: i32, %arg2: memref<16x32xf32, #tpu.memory_space<vmem>>, %arg3: memref<32x96xf32, #tpu.memory_space<vmem>>, %arg4: memref<16x96xf32, #tpu.memory_space<vmem>>) attributes {dimension_semantics = [#tpu.dimension_semantics<parallel>, #tpu.dimension_semantics<parallel>], iteration_bounds = array<i64: 1, 1>, scalar_prefetch = 0 : i64, scratch_operands = 0 : i64, tpu.core_type = #tpu.core_type<tc>, window_params = [{transform_indices = @transform_0, window_bounds = array<i64: 16, 32>}, {transform_indices = @transform_1, window_bounds = array<i64: 32, 96>}, {transform_indices = @transform_2, window_bounds = array<i64: 16, 96>}]} {
    %c0 = arith.constant 0 : index
    %c0_0 = arith.constant 0 : index
    %0 = vector.load %arg2[%c0, %c0_0] : memref<16x32xf32, #tpu.memory_space<vmem>>, vector<16x32xf32>
    %c0_1 = arith.constant 0 : index
    %c0_2 = arith.constant 0 : index
    %1 = vector.load %arg3[%c0_1, %c0_2] : memref<32x96xf32, #tpu.memory_space<vmem>>, vector<32x96xf32>
    %cst = arith.constant dense<0.000000e+00> : vector<16x96xf32>
    %2 = tpu.matmul %0, %1, %cst {dimension_numbers = #tpu.dot_dimension_numbers<[1], [0], [0], [1], [0, 0, 1, 1], [], []>} : vector<16x32xf32>, vector<32x96xf32>, vector<16x96xf32> -> vector<16x96xf32>
    %c0_3 = arith.constant 0 : index
    %c0_4 = arith.constant 0 : index
    %3 = vector.load %arg4[%c0_3, %c0_4] : memref<16x96xf32, #tpu.memory_space<vmem>>, vector<16x96xf32>
    tpu.vector_store %arg4[%c0_3, %c0_4], %2 {strides = array<i32>} : memref<16x96xf32, #tpu.memory_space<vmem>>, vector<16x96xf32>,
    return
  }
  func.func @transform_0(%arg0: i32, %arg1: i32) -> (i32, i32) {
    %c0_i32 = arith.constant 0 : i32
    %c0_i32_0 = arith.constant 0 : i32
    return %arg0, %c0_i32 : i32, i32
  }
  func.func @transform_1(%arg0: i32, %arg1: i32) -> (i32, i32) {
    %c0_i32 = arith.constant 0 : i32
    %c0_i32_0 = arith.constant 0 : i32
    return %c0_i32, %arg1 : i32, i32
  }
  func.func @transform_2(%arg0: i32, %arg1: i32) -> (i32, i32) {
    %c0_i32 = arith.constant 0 : i32
    return %arg0, %arg1 : i32, i32
  }
}

module attributes {stable_mosaic.version = 11 : i64} {
  func.func @_flash_attn_kernel(%arg0: i32, %arg1: i32, %arg2: i32, %arg3: i32, %arg4: memref<1x8x32xf32, #tpu.memory_space<vmem>>, %arg5: memref<1x8x32xf32, #tpu.memory_space<vmem>>, %arg6: memref<1x8x32xf32, #tpu.memory_space<vmem>>, %arg7: memref<1x8x32xf32, #tpu.memory_space<vmem>>, %arg8: memref<4x8x1xf32, #tpu.memory_space<vmem>>, %arg9: memref<4x8x1xf32, #tpu.memory_space<vmem>>, %arg10: memref<4x8x8xf32, #tpu.memory_space<vmem>>) attributes {dimension_semantics = [#tpu.dimension_semantics<parallel>, #tpu.dimension_semantics<parallel>, #tpu.dimension_semantics<parallel>, #tpu.dimension_semantics<arbitrary>], iteration_bounds = array<i64: 2, 1, 1, 1>, scalar_prefetch = 0 : i64, scratch_operands = 3 : i64, tpu.core_type = #tpu.core_type<tc>, window_params = [{transform_indices = @transform_0, window_bounds = array<i64: 1, 8, 32>}, {transform_indices = @transform_1, window_bounds = array<i64: 1, 8, 32>}, {transform_indices = @transform_2, window_bounds = array<i64: 1, 8, 32>}, {transform_indices = @transform_3, window_bounds = array<i64: 1, 8, 32>}]} {
    %c0_i32 = arith.constant 0 : i32
    %0 = arith.cmpi eq, %arg3, %c0_i32 : i32
    %1 = arith.extui %0 : i1 to i32
    %c0_i32_0 = arith.constant 0 : i32
    %2 = arith.cmpi ne, %1, %c0_i32_0 : i32
    scf.if %2 {
      %cst_99 = arith.constant 0xFF800000 : f32
      %160 = vector.broadcast %cst_99 : f32 to vector<4x8x1xf32>
      %c0_100 = arith.constant 0 : index
      %c0_101 = arith.constant 0 : index
      %c0_102 = arith.constant 0 : index
      %161 = vector.load %arg8[%c0_100, %c0_101, %c0_102] : memref<4x8x1xf32, #tpu.memory_space<vmem>>, vector<4x8x1xf32>
      tpu.vector_store %arg8[%c0_100, %c0_101, %c0_102], %160 {strides = array<i32>} : memref<4x8x1xf32, #tpu.memory_space<vmem>>, vector<4x8x1xf32>,
      %cst_103 = arith.constant 0.000000e+00 : f32
      %162 = vector.broadcast %cst_103 : f32 to vector<4x8x1xf32>
      %c0_104 = arith.constant 0 : index
      %c0_105 = arith.constant 0 : index
      %c0_106 = arith.constant 0 : index
      %163 = vector.load %arg9[%c0_104, %c0_105, %c0_106] : memref<4x8x1xf32, #tpu.memory_space<vmem>>, vector<4x8x1xf32>
      tpu.vector_store %arg9[%c0_104, %c0_105, %c0_106], %162 {strides = array<i32>} : memref<4x8x1xf32, #tpu.memory_space<vmem>>, vector<4x8x1xf32>,
      %cst_107 = arith.constant 0.000000e+00 : f32
      %164 = vector.broadcast %cst_107 : f32 to vector<4x8x8xf32>
      %c0_108 = arith.constant 0 : index
      %c0_109 = arith.constant 0 : index
      %c0_110 = arith.constant 0 : index
      %165 = vector.load %arg10[%c0_108, %c0_109, %c0_110] : memref<4x8x8xf32, #tpu.memory_space<vmem>>, vector<4x8x8xf32>
      tpu.vector_store %arg10[%c0_108, %c0_109, %c0_110], %164 {strides = array<i32>} : memref<4x8x8xf32, #tpu.memory_space<vmem>>, vector<4x8x8xf32>,
    } else {
    }
    %c0 = arith.constant 0 : index
    %c0_1 = arith.constant 0 : index
    %c0_2 = arith.constant 0 : index
    %3 = vector.load %arg4[%c0, %c0_1, %c0_2] : memref<1x8x32xf32, #tpu.memory_space<vmem>>, vector<1x8x32xf32>
    %4 = vector.shape_cast %3 : vector<1x8x32xf32> to vector<8x32xf32>
    %c0_3 = arith.constant 0 : index
    %c0_4 = arith.constant 0 : index
    %c0_5 = arith.constant 0 : index
    %5 = vector.load %arg5[%c0_3, %c0_4, %c0_5] : memref<1x8x32xf32, #tpu.memory_space<vmem>>, vector<1x8x32xf32>
    %6 = vector.shape_cast %5 : vector<1x8x32xf32> to vector<8x32xf32>
    %c0_6 = arith.constant 0 : index
    %c0_7 = arith.constant 0 : index
    %c0_8 = arith.constant 0 : index
    %7 = vector.load %arg6[%c0_6, %c0_7, %c0_8] : memref<1x8x32xf32, #tpu.memory_space<vmem>>, vector<1x8x32xf32>
    %8 = vector.shape_cast %7 : vector<1x8x32xf32> to vector<8x32xf32>
    %9 = vector.extract_strided_slice %4 {offsets = [0, 0], sizes = [8, 8], strides = [1, 1]} : vector<8x32xf32> to vector<8x8xf32>
    %10 = vector.extract_strided_slice %6 {offsets = [0, 0], sizes = [8, 8], strides = [1, 1]} : vector<8x32xf32> to vector<8x8xf32>
    %11 = vector.extract_strided_slice %8 {offsets = [0, 0], sizes = [8, 8], strides = [1, 1]} : vector<8x32xf32> to vector<8x8xf32>
    %cst = arith.constant dense<0.000000e+00> : vector<8x8xf32>
    %12 = tpu.matmul %9, %10, %cst {dimension_numbers = #tpu.dot_dimension_numbers<[1], [1], [0], [0], [0, 0, 1, 0], [], []>} : vector<8x8xf32>, vector<8x8xf32>, vector<8x8xf32> -> vector<8x8xf32>
    %cst_9 = arith.constant 0.353553385 : f32
    %13 = vector.broadcast %cst_9 : f32 to vector<8x8xf32>
    %14 = arith.mulf %12, %13 : vector<8x8xf32>
    %c0_10 = arith.constant 0 : index
    %c0_11 = arith.constant 0 : index
    %c0_12 = arith.constant 0 : index
    %15 = vector.load %arg8[%c0_10, %c0_11, %c0_12] : memref<4x8x1xf32, #tpu.memory_space<vmem>>, vector<1x8x1xf32>
    %16 = vector.shape_cast %15 : vector<1x8x1xf32> to vector<8x1xf32>
    %cst_13 = arith.constant dense<0xFF800000> : vector<8xf32>
    %17 = vector.multi_reduction <maximumf>, %14, %cst_13 [1] : vector<8x8xf32> to vector<8xf32>
    %18 = vector.shape_cast %17 : vector<8xf32> to vector<8x1xf32>
    %19 = arith.maximumf %16, %18 : vector<8x1xf32>
    %20 = arith.subf %16, %19 : vector<8x1xf32>
    %21 = math.exp %20 : vector<8x1xf32>
    %22 = vector.broadcast %19 : vector<8x1xf32> to vector<8x8xf32>
    %23 = arith.subf %14, %22 : vector<8x8xf32>
    %24 = math.exp %23 : vector<8x8xf32>
    %c0_14 = arith.constant 0 : index
    %c0_15 = arith.constant 0 : index
    %c0_16 = arith.constant 0 : index
    %25 = vector.load %arg9[%c0_14, %c0_15, %c0_16] : memref<4x8x1xf32, #tpu.memory_space<vmem>>, vector<1x8x1xf32>
    %26 = vector.shape_cast %25 : vector<1x8x1xf32> to vector<8x1xf32>
    %27 = arith.mulf %21, %26 : vector<8x1xf32>
    %cst_17 = arith.constant dense<0.000000e+00> : vector<8xf32>
    %28 = vector.multi_reduction <add>, %24, %cst_17 [1] : vector<8x8xf32> to vector<8xf32>
    %29 = vector.shape_cast %28 : vector<8xf32> to vector<8x1xf32>
    %30 = arith.addf %27, %29 : vector<8x1xf32>
    %c0_18 = arith.constant 0 : index
    %c0_19 = arith.constant 0 : index
    %c0_20 = arith.constant 0 : index
    %31 = vector.load %arg9[%c0_18, %c0_19, %c0_20] : memref<4x8x1xf32, #tpu.memory_space<vmem>>, vector<1x8x1xf32>
    %32 = vector.shape_cast %31 : vector<1x8x1xf32> to vector<8x1xf32>
    %33 = vector.shape_cast %30 : vector<8x1xf32> to vector<1x8x1xf32>
    tpu.vector_store %arg9[%c0_18, %c0_19, %c0_20], %33 {strides = array<i32>} : memref<4x8x1xf32, #tpu.memory_space<vmem>>, vector<1x8x1xf32>,
    %c0_21 = arith.constant 0 : index
    %c0_22 = arith.constant 0 : index
    %c0_23 = arith.constant 0 : index
    %34 = vector.load %arg10[%c0_21, %c0_22, %c0_23] : memref<4x8x8xf32, #tpu.memory_space<vmem>>, vector<1x8x8xf32>
    %35 = vector.shape_cast %34 : vector<1x8x8xf32> to vector<8x8xf32>
    %36 = vector.broadcast %21 : vector<8x1xf32> to vector<8x8xf32>
    %37 = arith.mulf %36, %35 : vector<8x8xf32>
    %cst_24 = arith.constant dense<0.000000e+00> : vector<8x8xf32>
    %38 = tpu.matmul %24, %11, %cst_24 {dimension_numbers = #tpu.dot_dimension_numbers<[1], [0], [0], [1], [0, 0, 1, 1], [], []>} : vector<8x8xf32>, vector<8x8xf32>, vector<8x8xf32> -> vector<8x8xf32>
    %39 = arith.addf %37, %38 : vector<8x8xf32>
    %c0_25 = arith.constant 0 : index
    %c0_26 = arith.constant 0 : index
    %c0_27 = arith.constant 0 : index
    %40 = vector.load %arg10[%c0_25, %c0_26, %c0_27] : memref<4x8x8xf32, #tpu.memory_space<vmem>>, vector<1x8x8xf32>
    %41 = vector.shape_cast %40 : vector<1x8x8xf32> to vector<8x8xf32>
    %42 = vector.shape_cast %39 : vector<8x8xf32> to vector<1x8x8xf32>
    tpu.vector_store %arg10[%c0_25, %c0_26, %c0_27], %42 {strides = array<i32>} : memref<4x8x8xf32, #tpu.memory_space<vmem>>, vector<1x8x8xf32>,
    %c0_28 = arith.constant 0 : index
    %c0_29 = arith.constant 0 : index
    %c0_30 = arith.constant 0 : index
    %43 = vector.load %arg8[%c0_28, %c0_29, %c0_30] : memref<4x8x1xf32, #tpu.memory_space<vmem>>, vector<1x8x1xf32>
    %44 = vector.shape_cast %43 : vector<1x8x1xf32> to vector<8x1xf32>
    %45 = vector.shape_cast %19 : vector<8x1xf32> to vector<1x8x1xf32>
    tpu.vector_store %arg8[%c0_28, %c0_29, %c0_30], %45 {strides = array<i32>} : memref<4x8x1xf32, #tpu.memory_space<vmem>>, vector<1x8x1xf32>,
    %46 = vector.extract_strided_slice %4 {offsets = [0, 8], sizes = [8, 8], strides = [1, 1]} : vector<8x32xf32> to vector<8x8xf32>
    %47 = vector.extract_strided_slice %6 {offsets = [0, 8], sizes = [8, 8], strides = [1, 1]} : vector<8x32xf32> to vector<8x8xf32>
    %48 = vector.extract_strided_slice %8 {offsets = [0, 8], sizes = [8, 8], strides = [1, 1]} : vector<8x32xf32> to vector<8x8xf32>
    %cst_31 = arith.constant dense<0.000000e+00> : vector<8x8xf32>
    %49 = tpu.matmul %46, %47, %cst_31 {dimension_numbers = #tpu.dot_dimension_numbers<[1], [1], [0], [0], [0, 0, 1, 0], [], []>} : vector<8x8xf32>, vector<8x8xf32>, vector<8x8xf32> -> vector<8x8xf32>
    %cst_32 = arith.constant 0.353553385 : f32
    %50 = vector.broadcast %cst_32 : f32 to vector<8x8xf32>
    %51 = arith.mulf %49, %50 : vector<8x8xf32>
    %c1 = arith.constant 1 : index
    %c0_33 = arith.constant 0 : index
    %c0_34 = arith.constant 0 : index
    %52 = vector.load %arg8[%c1, %c0_33, %c0_34] : memref<4x8x1xf32, #tpu.memory_space<vmem>>, vector<1x8x1xf32>
    %53 = vector.shape_cast %52 : vector<1x8x1xf32> to vector<8x1xf32>
    %cst_35 = arith.constant dense<0xFF800000> : vector<8xf32>
    %54 = vector.multi_reduction <maximumf>, %51, %cst_35 [1] : vector<8x8xf32> to vector<8xf32>
    %55 = vector.shape_cast %54 : vector<8xf32> to vector<8x1xf32>
    %56 = arith.maximumf %53, %55 : vector<8x1xf32>
    %57 = arith.subf %53, %56 : vector<8x1xf32>
    %58 = math.exp %57 : vector<8x1xf32>
    %59 = vector.broadcast %56 : vector<8x1xf32> to vector<8x8xf32>
    %60 = arith.subf %51, %59 : vector<8x8xf32>
    %61 = math.exp %60 : vector<8x8xf32>
    %c1_36 = arith.constant 1 : index
    %c0_37 = arith.constant 0 : index
    %c0_38 = arith.constant 0 : index
    %62 = vector.load %arg9[%c1_36, %c0_37, %c0_38] : memref<4x8x1xf32, #tpu.memory_space<vmem>>, vector<1x8x1xf32>
    %63 = vector.shape_cast %62 : vector<1x8x1xf32> to vector<8x1xf32>
    %64 = arith.mulf %58, %63 : vector<8x1xf32>
    %cst_39 = arith.constant dense<0.000000e+00> : vector<8xf32>
    %65 = vector.multi_reduction <add>, %61, %cst_39 [1] : vector<8x8xf32> to vector<8xf32>
    %66 = vector.shape_cast %65 : vector<8xf32> to vector<8x1xf32>
    %67 = arith.addf %64, %66 : vector<8x1xf32>
    %c1_40 = arith.constant 1 : index
    %c0_41 = arith.constant 0 : index
    %c0_42 = arith.constant 0 : index
    %68 = vector.load %arg9[%c1_40, %c0_41, %c0_42] : memref<4x8x1xf32, #tpu.memory_space<vmem>>, vector<1x8x1xf32>
    %69 = vector.shape_cast %68 : vector<1x8x1xf32> to vector<8x1xf32>
    %70 = vector.shape_cast %67 : vector<8x1xf32> to vector<1x8x1xf32>
    tpu.vector_store %arg9[%c1_40, %c0_41, %c0_42], %70 {strides = array<i32>} : memref<4x8x1xf32, #tpu.memory_space<vmem>>, vector<1x8x1xf32>,
    %c1_43 = arith.constant 1 : index
    %c0_44 = arith.constant 0 : index
    %c0_45 = arith.constant 0 : index
    %71 = vector.load %arg10[%c1_43, %c0_44, %c0_45] : memref<4x8x8xf32, #tpu.memory_space<vmem>>, vector<1x8x8xf32>
    %72 = vector.shape_cast %71 : vector<1x8x8xf32> to vector<8x8xf32>
    %73 = vector.broadcast %58 : vector<8x1xf32> to vector<8x8xf32>
    %74 = arith.mulf %73, %72 : vector<8x8xf32>
    %cst_46 = arith.constant dense<0.000000e+00> : vector<8x8xf32>
    %75 = tpu.matmul %61, %48, %cst_46 {dimension_numbers = #tpu.dot_dimension_numbers<[1], [0], [0], [1], [0, 0, 1, 1], [], []>} : vector<8x8xf32>, vector<8x8xf32>, vector<8x8xf32> -> vector<8x8xf32>
    %76 = arith.addf %74, %75 : vector<8x8xf32>
    %c1_47 = arith.constant 1 : index
    %c0_48 = arith.constant 0 : index
    %c0_49 = arith.constant 0 : index
    %77 = vector.load %arg10[%c1_47, %c0_48, %c0_49] : memref<4x8x8xf32, #tpu.memory_space<vmem>>, vector<1x8x8xf32>
    %78 = vector.shape_cast %77 : vector<1x8x8xf32> to vector<8x8xf32>
    %79 = vector.shape_cast %76 : vector<8x8xf32> to vector<1x8x8xf32>
    tpu.vector_store %arg10[%c1_47, %c0_48, %c0_49], %79 {strides = array<i32>} : memref<4x8x8xf32, #tpu.memory_space<vmem>>, vector<1x8x8xf32>,
    %c1_50 = arith.constant 1 : index
    %c0_51 = arith.constant 0 : index
    %c0_52 = arith.constant 0 : index
    %80 = vector.load %arg8[%c1_50, %c0_51, %c0_52] : memref<4x8x1xf32, #tpu.memory_space<vmem>>, vector<1x8x1xf32>
    %81 = vector.shape_cast %80 : vector<1x8x1xf32> to vector<8x1xf32>
    %82 = vector.shape_cast %56 : vector<8x1xf32> to vector<1x8x1xf32>
    tpu.vector_store %arg8[%c1_50, %c0_51, %c0_52], %82 {strides = array<i32>} : memref<4x8x1xf32, #tpu.memory_space<vmem>>, vector<1x8x1xf32>,
    %83 = vector.extract_strided_slice %4 {offsets = [0, 16], sizes = [8, 8], strides = [1, 1]} : vector<8x32xf32> to vector<8x8xf32>
    %84 = vector.extract_strided_slice %6 {offsets = [0, 16], sizes = [8, 8], strides = [1, 1]} : vector<8x32xf32> to vector<8x8xf32>
    %85 = vector.extract_strided_slice %8 {offsets = [0, 16], sizes = [8, 8], strides = [1, 1]} : vector<8x32xf32> to vector<8x8xf32>
    %cst_53 = arith.constant dense<0.000000e+00> : vector<8x8xf32>
    %86 = tpu.matmul %83, %84, %cst_53 {dimension_numbers = #tpu.dot_dimension_numbers<[1], [1], [0], [0], [0, 0, 1, 0], [], []>} : vector<8x8xf32>, vector<8x8xf32>, vector<8x8xf32> -> vector<8x8xf32>
    %cst_54 = arith.constant 0.353553385 : f32
    %87 = vector.broadcast %cst_54 : f32 to vector<8x8xf32>
    %88 = arith.mulf %86, %87 : vector<8x8xf32>
    %c2 = arith.constant 2 : index
    %c0_55 = arith.constant 0 : index
    %c0_56 = arith.constant 0 : index
    %89 = vector.load %arg8[%c2, %c0_55, %c0_56] : memref<4x8x1xf32, #tpu.memory_space<vmem>>, vector<1x8x1xf32>
    %90 = vector.shape_cast %89 : vector<1x8x1xf32> to vector<8x1xf32>
    %cst_57 = arith.constant dense<0xFF800000> : vector<8xf32>
    %91 = vector.multi_reduction <maximumf>, %88, %cst_57 [1] : vector<8x8xf32> to vector<8xf32>
    %92 = vector.shape_cast %91 : vector<8xf32> to vector<8x1xf32>
    %93 = arith.maximumf %90, %92 : vector<8x1xf32>
    %94 = arith.subf %90, %93 : vector<8x1xf32>
    %95 = math.exp %94 : vector<8x1xf32>
    %96 = vector.broadcast %93 : vector<8x1xf32> to vector<8x8xf32>
    %97 = arith.subf %88, %96 : vector<8x8xf32>
    %98 = math.exp %97 : vector<8x8xf32>
    %c2_58 = arith.constant 2 : index
    %c0_59 = arith.constant 0 : index
    %c0_60 = arith.constant 0 : index
    %99 = vector.load %arg9[%c2_58, %c0_59, %c0_60] : memref<4x8x1xf32, #tpu.memory_space<vmem>>, vector<1x8x1xf32>
    %100 = vector.shape_cast %99 : vector<1x8x1xf32> to vector<8x1xf32>
    %101 = arith.mulf %95, %100 : vector<8x1xf32>
    %cst_61 = arith.constant dense<0.000000e+00> : vector<8xf32>
    %102 = vector.multi_reduction <add>, %98, %cst_61 [1] : vector<8x8xf32> to vector<8xf32>
    %103 = vector.shape_cast %102 : vector<8xf32> to vector<8x1xf32>
    %104 = arith.addf %101, %103 : vector<8x1xf32>
    %c2_62 = arith.constant 2 : index
    %c0_63 = arith.constant 0 : index
    %c0_64 = arith.constant 0 : index
    %105 = vector.load %arg9[%c2_62, %c0_63, %c0_64] : memref<4x8x1xf32, #tpu.memory_space<vmem>>, vector<1x8x1xf32>
    %106 = vector.shape_cast %105 : vector<1x8x1xf32> to vector<8x1xf32>
    %107 = vector.shape_cast %104 : vector<8x1xf32> to vector<1x8x1xf32>
    tpu.vector_store %arg9[%c2_62, %c0_63, %c0_64], %107 {strides = array<i32>} : memref<4x8x1xf32, #tpu.memory_space<vmem>>, vector<1x8x1xf32>,
    %c2_65 = arith.constant 2 : index
    %c0_66 = arith.constant 0 : index
    %c0_67 = arith.constant 0 : index
    %108 = vector.load %arg10[%c2_65, %c0_66, %c0_67] : memref<4x8x8xf32, #tpu.memory_space<vmem>>, vector<1x8x8xf32>
    %109 = vector.shape_cast %108 : vector<1x8x8xf32> to vector<8x8xf32>
    %110 = vector.broadcast %95 : vector<8x1xf32> to vector<8x8xf32>
    %111 = arith.mulf %110, %109 : vector<8x8xf32>
    %cst_68 = arith.constant dense<0.000000e+00> : vector<8x8xf32>
    %112 = tpu.matmul %98, %85, %cst_68 {dimension_numbers = #tpu.dot_dimension_numbers<[1], [0], [0], [1], [0, 0, 1, 1], [], []>} : vector<8x8xf32>, vector<8x8xf32>, vector<8x8xf32> -> vector<8x8xf32>
    %113 = arith.addf %111, %112 : vector<8x8xf32>
    %c2_69 = arith.constant 2 : index
    %c0_70 = arith.constant 0 : index
    %c0_71 = arith.constant 0 : index
    %114 = vector.load %arg10[%c2_69, %c0_70, %c0_71] : memref<4x8x8xf32, #tpu.memory_space<vmem>>, vector<1x8x8xf32>
    %115 = vector.shape_cast %114 : vector<1x8x8xf32> to vector<8x8xf32>
    %116 = vector.shape_cast %113 : vector<8x8xf32> to vector<1x8x8xf32>
    tpu.vector_store %arg10[%c2_69, %c0_70, %c0_71], %116 {strides = array<i32>} : memref<4x8x8xf32, #tpu.memory_space<vmem>>, vector<1x8x8xf32>,
    %c2_72 = arith.constant 2 : index
    %c0_73 = arith.constant 0 : index
    %c0_74 = arith.constant 0 : index
    %117 = vector.load %arg8[%c2_72, %c0_73, %c0_74] : memref<4x8x1xf32, #tpu.memory_space<vmem>>, vector<1x8x1xf32>
    %118 = vector.shape_cast %117 : vector<1x8x1xf32> to vector<8x1xf32>
    %119 = vector.shape_cast %93 : vector<8x1xf32> to vector<1x8x1xf32>
    tpu.vector_store %arg8[%c2_72, %c0_73, %c0_74], %119 {strides = array<i32>} : memref<4x8x1xf32, #tpu.memory_space<vmem>>, vector<1x8x1xf32>,
    %120 = vector.extract_strided_slice %4 {offsets = [0, 24], sizes = [8, 8], strides = [1, 1]} : vector<8x32xf32> to vector<8x8xf32>
    %121 = vector.extract_strided_slice %6 {offsets = [0, 24], sizes = [8, 8], strides = [1, 1]} : vector<8x32xf32> to vector<8x8xf32>
    %122 = vector.extract_strided_slice %8 {offsets = [0, 24], sizes = [8, 8], strides = [1, 1]} : vector<8x32xf32> to vector<8x8xf32>
    %cst_75 = arith.constant dense<0.000000e+00> : vector<8x8xf32>
    %123 = tpu.matmul %120, %121, %cst_75 {dimension_numbers = #tpu.dot_dimension_numbers<[1], [1], [0], [0], [0, 0, 1, 0], [], []>} : vector<8x8xf32>, vector<8x8xf32>, vector<8x8xf32> -> vector<8x8xf32>
    %cst_76 = arith.constant 0.353553385 : f32
    %124 = vector.broadcast %cst_76 : f32 to vector<8x8xf32>
    %125 = arith.mulf %123, %124 : vector<8x8xf32>
    %c3 = arith.constant 3 : index
    %c0_77 = arith.constant 0 : index
    %c0_78 = arith.constant 0 : index
    %126 = vector.load %arg8[%c3, %c0_77, %c0_78] : memref<4x8x1xf32, #tpu.memory_space<vmem>>, vector<1x8x1xf32>
    %127 = vector.shape_cast %126 : vector<1x8x1xf32> to vector<8x1xf32>
    %cst_79 = arith.constant dense<0xFF800000> : vector<8xf32>
    %128 = vector.multi_reduction <maximumf>, %125, %cst_79 [1] : vector<8x8xf32> to vector<8xf32>
    %129 = vector.shape_cast %128 : vector<8xf32> to vector<8x1xf32>
    %130 = arith.maximumf %127, %129 : vector<8x1xf32>
    %131 = arith.subf %127, %130 : vector<8x1xf32>
    %132 = math.exp %131 : vector<8x1xf32>
    %133 = vector.broadcast %130 : vector<8x1xf32> to vector<8x8xf32>
    %134 = arith.subf %125, %133 : vector<8x8xf32>
    %135 = math.exp %134 : vector<8x8xf32>
    %c3_80 = arith.constant 3 : index
    %c0_81 = arith.constant 0 : index
    %c0_82 = arith.constant 0 : index
    %136 = vector.load %arg9[%c3_80, %c0_81, %c0_82] : memref<4x8x1xf32, #tpu.memory_space<vmem>>, vector<1x8x1xf32>
    %137 = vector.shape_cast %136 : vector<1x8x1xf32> to vector<8x1xf32>
    %138 = arith.mulf %132, %137 : vector<8x1xf32>
    %cst_83 = arith.constant dense<0.000000e+00> : vector<8xf32>
    %139 = vector.multi_reduction <add>, %135, %cst_83 [1] : vector<8x8xf32> to vector<8xf32>
    %140 = vector.shape_cast %139 : vector<8xf32> to vector<8x1xf32>
    %141 = arith.addf %138, %140 : vector<8x1xf32>
    %c3_84 = arith.constant 3 : index
    %c0_85 = arith.constant 0 : index
    %c0_86 = arith.constant 0 : index
    %142 = vector.load %arg9[%c3_84, %c0_85, %c0_86] : memref<4x8x1xf32, #tpu.memory_space<vmem>>, vector<1x8x1xf32>
    %143 = vector.shape_cast %142 : vector<1x8x1xf32> to vector<8x1xf32>
    %144 = vector.shape_cast %141 : vector<8x1xf32> to vector<1x8x1xf32>
    tpu.vector_store %arg9[%c3_84, %c0_85, %c0_86], %144 {strides = array<i32>} : memref<4x8x1xf32, #tpu.memory_space<vmem>>, vector<1x8x1xf32>,
    %c3_87 = arith.constant 3 : index
    %c0_88 = arith.constant 0 : index
    %c0_89 = arith.constant 0 : index
    %145 = vector.load %arg10[%c3_87, %c0_88, %c0_89] : memref<4x8x8xf32, #tpu.memory_space<vmem>>, vector<1x8x8xf32>
    %146 = vector.shape_cast %145 : vector<1x8x8xf32> to vector<8x8xf32>
    %147 = vector.broadcast %132 : vector<8x1xf32> to vector<8x8xf32>
    %148 = arith.mulf %147, %146 : vector<8x8xf32>
    %cst_90 = arith.constant dense<0.000000e+00> : vector<8x8xf32>
    %149 = tpu.matmul %135, %122, %cst_90 {dimension_numbers = #tpu.dot_dimension_numbers<[1], [0], [0], [1], [0, 0, 1, 1], [], []>} : vector<8x8xf32>, vector<8x8xf32>, vector<8x8xf32> -> vector<8x8xf32>
    %150 = arith.addf %148, %149 : vector<8x8xf32>
    %c3_91 = arith.constant 3 : index
    %c0_92 = arith.constant 0 : index
    %c0_93 = arith.constant 0 : index
    %151 = vector.load %arg10[%c3_91, %c0_92, %c0_93] : memref<4x8x8xf32, #tpu.memory_space<vmem>>, vector<1x8x8xf32>
    %152 = vector.shape_cast %151 : vector<1x8x8xf32> to vector<8x8xf32>
    %153 = vector.shape_cast %150 : vector<8x8xf32> to vector<1x8x8xf32>
    tpu.vector_store %arg10[%c3_91, %c0_92, %c0_93], %153 {strides = array<i32>} : memref<4x8x8xf32, #tpu.memory_space<vmem>>, vector<1x8x8xf32>,
    %c3_94 = arith.constant 3 : index
    %c0_95 = arith.constant 0 : index
    %c0_96 = arith.constant 0 : index
    %154 = vector.load %arg8[%c3_94, %c0_95, %c0_96] : memref<4x8x1xf32, #tpu.memory_space<vmem>>, vector<1x8x1xf32>
    %155 = vector.shape_cast %154 : vector<1x8x1xf32> to vector<8x1xf32>
    %156 = vector.shape_cast %130 : vector<8x1xf32> to vector<1x8x1xf32>
    tpu.vector_store %arg8[%c3_94, %c0_95, %c0_96], %156 {strides = array<i32>} : memref<4x8x1xf32, #tpu.memory_space<vmem>>, vector<1x8x1xf32>,
    %c0_i32_97 = arith.constant 0 : i32
    %157 = arith.cmpi eq, %arg3, %c0_i32_97 : i32
    %158 = arith.extui %157 : i1 to i32
    %c0_i32_98 = arith.constant 0 : i32
    %159 = arith.cmpi ne, %158, %c0_i32_98 : i32
    scf.if %159 {
      %c0_99 = arith.constant 0 : index
      %c0_100 = arith.constant 0 : index
      %c0_101 = arith.constant 0 : index
      %160 = vector.load %arg9[%c0_99, %c0_100, %c0_101] : memref<4x8x1xf32, #tpu.memory_space<vmem>>, vector<1x8x1xf32>
      %161 = vector.shape_cast %160 : vector<1x8x1xf32> to vector<8x1xf32>
      %162 = tpu.reciprocal %161 : vector<8x1xf32> -> vector<8x1xf32>
      %c0_102 = arith.constant 0 : index
      %c0_103 = arith.constant 0 : index
      %c0_104 = arith.constant 0 : index
      %163 = vector.load %arg10[%c0_102, %c0_103, %c0_104] : memref<4x8x8xf32, #tpu.memory_space<vmem>>, vector<1x8x8xf32>
      %164 = vector.shape_cast %163 : vector<1x8x8xf32> to vector<8x8xf32>
      %165 = vector.broadcast %162 : vector<8x1xf32> to vector<8x8xf32>
      %166 = arith.mulf %164, %165 : vector<8x8xf32>
      %c1_105 = arith.constant 1 : index
      %c0_106 = arith.constant 0 : index
      %c0_107 = arith.constant 0 : index
      %167 = vector.load %arg9[%c1_105, %c0_106, %c0_107] : memref<4x8x1xf32, #tpu.memory_space<vmem>>, vector<1x8x1xf32>
      %168 = vector.shape_cast %167 : vector<1x8x1xf32> to vector<8x1xf32>
      %169 = tpu.reciprocal %168 : vector<8x1xf32> -> vector<8x1xf32>
      %c1_108 = arith.constant 1 : index
      %c0_109 = arith.constant 0 : index
      %c0_110 = arith.constant 0 : index
      %170 = vector.load %arg10[%c1_108, %c0_109, %c0_110] : memref<4x8x8xf32, #tpu.memory_space<vmem>>, vector<1x8x8xf32>
      %171 = vector.shape_cast %170 : vector<1x8x8xf32> to vector<8x8xf32>
      %172 = vector.broadcast %169 : vector<8x1xf32> to vector<8x8xf32>
      %173 = arith.mulf %171, %172 : vector<8x8xf32>
      %c2_111 = arith.constant 2 : index
      %c0_112 = arith.constant 0 : index
      %c0_113 = arith.constant 0 : index
      %174 = vector.load %arg9[%c2_111, %c0_112, %c0_113] : memref<4x8x1xf32, #tpu.memory_space<vmem>>, vector<1x8x1xf32>
      %175 = vector.shape_cast %174 : vector<1x8x1xf32> to vector<8x1xf32>
      %176 = tpu.reciprocal %175 : vector<8x1xf32> -> vector<8x1xf32>
      %c2_114 = arith.constant 2 : index
      %c0_115 = arith.constant 0 : index
      %c0_116 = arith.constant 0 : index
      %177 = vector.load %arg10[%c2_114, %c0_115, %c0_116] : memref<4x8x8xf32, #tpu.memory_space<vmem>>, vector<1x8x8xf32>
      %178 = vector.shape_cast %177 : vector<1x8x8xf32> to vector<8x8xf32>
      %179 = vector.broadcast %176 : vector<8x1xf32> to vector<8x8xf32>
      %180 = arith.mulf %178, %179 : vector<8x8xf32>
      %c3_117 = arith.constant 3 : index
      %c0_118 = arith.constant 0 : index
      %c0_119 = arith.constant 0 : index
      %181 = vector.load %arg9[%c3_117, %c0_118, %c0_119] : memref<4x8x1xf32, #tpu.memory_space<vmem>>, vector<1x8x1xf32>
      %182 = vector.shape_cast %181 : vector<1x8x1xf32> to vector<8x1xf32>
      %183 = tpu.reciprocal %182 : vector<8x1xf32> -> vector<8x1xf32>
      %c3_120 = arith.constant 3 : index
      %c0_121 = arith.constant 0 : index
      %c0_122 = arith.constant 0 : index
      %184 = vector.load %arg10[%c3_120, %c0_121, %c0_122] : memref<4x8x8xf32, #tpu.memory_space<vmem>>, vector<1x8x8xf32>
      %185 = vector.shape_cast %184 : vector<1x8x8xf32> to vector<8x8xf32>
      %186 = vector.broadcast %183 : vector<8x1xf32> to vector<8x8xf32>
      %187 = arith.mulf %185, %186 : vector<8x8xf32>
      %188 = tpu.concatenate %166, %173, %180, %187 in 1 : vector<8x8xf32>, vector<8x8xf32>, vector<8x8xf32>, vector<8x8xf32> -> vector<8x32xf32>
      %c0_123 = arith.constant 0 : index
      %c0_124 = arith.constant 0 : index
      %c0_125 = arith.constant 0 : index
      %189 = vector.load %arg7[%c0_123, %c0_124, %c0_125] : memref<1x8x32xf32, #tpu.memory_space<vmem>>, vector<1x8x32xf32>
      %190 = vector.shape_cast %189 : vector<1x8x32xf32> to vector<8x32xf32>
      %191 = vector.shape_cast %188 : vector<8x32xf32> to vector<1x8x32xf32>
      tpu.vector_store %arg7[%c0_123, %c0_124, %c0_125], %191 {strides = array<i32>} : memref<1x8x32xf32, #tpu.memory_space<vmem>>, vector<1x8x32xf32>,
    } else {
    }
    return
  }
  func.func @transform_0(%arg0: i32, %arg1: i32, %arg2: i32, %arg3: i32) -> (i32, i32, i32) {
    %c0_i32 = arith.constant 0 : i32
    %c0_i32_0 = arith.constant 0 : i32
    return %arg0, %arg2, %c0_i32 : i32, i32, i32
  }
  func.func @transform_1(%arg0: i32, %arg1: i32, %arg2: i32, %arg3: i32) -> (i32, i32, i32) {
    %c0_i32 = arith.constant 0 : i32
    %c0_i32_0 = arith.constant 0 : i32
    return %arg0, %arg3, %c0_i32 : i32, i32, i32
  }
  func.func @transform_2(%arg0: i32, %arg1: i32, %arg2: i32, %arg3: i32) -> (i32, i32, i32) {
    %c0_i32 = arith.constant 0 : i32
    %c0_i32_0 = arith.constant 0 : i32
    return %arg0, %arg3, %c0_i32 : i32, i32, i32
  }
  func.func @transform_3(%arg0: i32, %arg1: i32, %arg2: i32, %arg3: i32) -> (i32, i32, i32) {
    %c0_i32 = arith.constant 0 : i32
    %c0_i32_0 = arith.constant 0 : i32
    return %arg0, %arg2, %c0_i32 : i32, i32, i32
  }
}

</mosaic_0001>

<bundles_post_ra>
// kernel: multi_head_attention.3
= control target key start
LH: loop header
LB: loop body
LE: loop exit
PB: predicated region body
PF: predicated region fallthrough
CT: control target
= control target key end

     0   :  { %7 = vsyncpa [#allocation3], 0  ;;  %s318_s0 = inlined_call_operand.hbm [shape: f32[16,32], index: 0, kind: input, shape index: {}]   ;;  %s319_s1 = inlined_call_operand.hbm [shape: f32[32,96], index: 1, kind: input, shape index: {}]   ;;  %s320_s2 = inlined_call_operand.hbm [shape: f32[16,96], index: 2, kind: output, shape index: {}]  }
   0x1   :  { %8 = vsyncpa [#allocation6], 0 }
   0x2   :  { %9 = vsyncpa [#allocation4], 0  ;;  %s253_s9 = smov [#allocation2]   ;;  %s181_s13 = scalar_lea.hbm %s318_s0, 256 }
   0x3   :  { %s15_s10 = sshll.u32 %s253_s9, 4  ;;  %p182_p0 = scmp.ne.s32.totalorder %s318_s0, %s181_s13  ;;  %s16_s10 = int_to_ptr.vmem [resolvable:$true] %s15_s10 }
   0x4   :  { %p185_p1 = scmp.lt.u32.totalorder %s181_s13, %s318_s0 }
   0x6   :  { %p187_p2 = pnand %p185_p1, %p182_p0 }
   0x8   :  { %190 = shalt.err (!%p187_p2)
}
   0x9   :  { %s191_s18 = scalar_lea.vmem %s16_s10, 256  ;;  %p196_p4 = scmp.lt.s32.totalorder %s16_s10, %s16_s10 }
   0xa   :  { %p192_p3 = scmp.ne.s32.totalorder %s16_s10, %s191_s18  ;;  %p197_p5 = scmp.lt.s32.totalorder %s191_s18, %s191_s18 }
   0xc   :  { %p198_p6 = por %p197_p5, %p196_p4 }
   0xe   :  { %p199_p7 = pnand %p198_p6, %p192_p3 }
  0x10   :  { %202 = shalt.err (!%p199_p7)
}
  0x11   :  { %s254_s19 = smov 128   ;;  %s255_s20 = smov 8  }
  0x12   :  { %21 = dma.hbm_to_vmem [thread:$0]  %s318_s0, 256, %s16_s10, [#allocation3], %s254_s19, %s254_s19, %s255_s20  }
  0x13   :  { %s256_s23 = smov [#allocation5]   ;;  %s203_s27 = scalar_lea.hbm %s319_s1, 512 }
  0x14   :  { %s27_s24 = sshll.u32 %s256_s23, 4  ;;  %p204_p8 = scmp.ne.s32.totalorder %s319_s1, %s203_s27  ;;  %s28_s24 = int_to_ptr.vmem [resolvable:$true] %s27_s24 }
  0x15   :  { %p207_p9 = scmp.lt.u32.totalorder %s203_s27, %s319_s1 }
  0x17   :  { %p209_p10 = pnand %p207_p9, %p204_p8 }
  0x19   :  { %212 = shalt.err (!%p209_p10)
}
  0x1a   :  { %s213_s4 = scalar_lea.vmem %s28_s24, 512  ;;  %p218_p12 = scmp.lt.s32.totalorder %s28_s24, %s28_s24 }
  0x1b   :  { %p214_p11 = scmp.ne.s32.totalorder %s28_s24, %s213_s4  ;;  %p219_p13 = scmp.lt.s32.totalorder %s213_s4, %s213_s4 }
  0x1d   :  { %p220_p0 = por %p219_p13, %p218_p12 }
  0x1f   :  { %p221_p1 = pnand %p220_p0, %p214_p11 }
  0x21   :  { %224 = shalt.err (!%p221_p1)
}
  0x22   :  { %33 = dma.hbm_to_vmem [thread:$0]  %s319_s1, 512, %s28_s24, [#allocation6], %s254_s19, %s254_s19, %s255_s20  }
  0x23   :  { %247 = dma.done.wait [#allocation3], 256  }
  0x24   :  { %248 = vsyncadd [#allocation3], 4294967040 }
  0x25   :  { %249 = dma.done.wait [#allocation6], 512  }
  0x26   :  { %250 = vsyncadd [#allocation6], 4294966784  ;;  %vm46_vm0 = vcmask 261120   ;;  %v42_v0 = vld [vmem:[#allocation5] sm:$0xff]  ;;  %v43_v1 = vld [vmem:[#allocation5 + $0x8] sm:$0xff]  ;;  %s257_s1 = smov [#allocation7]  }
  0x27   :  { %v44_v2 = vld [vmem:[#allocation5 + $0x10] sm:$0xff]  ;;  %v168_v3 = vpack.c.bf16 %v43_v1, %v42_v0  ;;  %v45_v4 = vld [vmem:[#allocation5 + $0x18] sm:$0xff]  ;;  %s136_s6 = sshll.u32 %s257_s1, 4  ;;  %vm128_vm1 = vcmask 785408   ;;  %s137_s6 = int_to_ptr.vmem [resolvable:$true] %s136_s6 }
  0x28   :  { %v40_v5 = vld [vmem:[#allocation2] sm:$0xff]  ;;  %v172_v6 = vpack.c.bf16 %v45_v4, %v44_v2  ;;  %v41_v7 = vld [vmem:[#allocation2 + $0x8] sm:$0xff]  ;;  %s225_s7 = scalar_lea.vmem %s137_s6, 256  ;;  %p230_p3 = scmp.lt.s32.totalorder %s137_s6, %s137_s6 }
  0x29   :  { %165 = vmatprep.mubr.msk.f32.mxu0 %vm46_vm0, %v40_v5  ;;  %169 = vmatprep.subr.bf16.mxu0 %v168_v3  ;;  %p226_p2 = scmp.ne.s32.totalorder %s137_s6, %s225_s7  ;;  %p231_p4 = scmp.lt.s32.totalorder %s225_s7, %s225_s7 }
  0x2a   :  { %171 = vmatpush3.bf16.msra.mxu0 %v168_v3 }
  0x2b   :  { %173 = vmatprep.subr.bf16.mxu0 %v172_v6  ;;  %p232_p5 = por %p231_p4, %p230_p3 }
  0x2d   :  { %p233_p6 = pnand %p232_p5, %p226_p2 }
  0x2e   :  { %175 = vmatpush3.bf16.msra.mxu0 %v172_v6 }
  0x31   :  { %166 = vmatmul.mubr.msk.f32.vlgmr.msra.gmra.mrb[0].mxu0 %vm46_vm0, %v41_v7 }
 0x104   :  { %v167_v8 = vpop.f32.mrb[0].mxu0 }
 0x105   :  { %130 = vst.msk [vmem:[#allocation7 + $0x8] sm:$0xff] %vm128_vm1, %v167_v8  ;;  %v119_v9 = vpop.f32.mrb[1].mxu0 }
 0x106   :  { %129 = vst.msk [vmem:[#allocation7] sm:$0xff] %vm128_vm1, %v119_v9 }
 0x107   :  { %236 = shalt.err (!%p233_p6)
}
 0x108   :  { %s237_s10 = scalar_lea.hbm %s320_s2, 256 }
 0x109   :  { %p238_p7 = scmp.ne.s32.totalorder %s320_s2, %s237_s10  ;;  %p241_p8 = scmp.lt.u32.totalorder %s237_s10, %s320_s2 }
 0x10b   :  { %p243_p9 = pnand %p241_p8, %p238_p7 }
 0x10d   :  { %246 = shalt.err (!%p243_p9)
}
 0x10e   :  { %142 = dma.vmem_to_hbm [thread:$0]  %s137_s6, 256, %s320_s2, [#allocation4], %s254_s19, %s254_s19, %s255_s20  }
 0x10f   :  { %251 = dma.done.wait [#allocation4], 256  }
 0x110   :  { %252 = vsyncadd [#allocation4], 4294967040 }
 0x111   :  { %146 = vsyncpa [#allocation3], 1 }
 0x112   :  { %147 = vsyncpa [#allocation6], 1 }
 0x113   :  { %148 = vsyncpa [#allocation4], 1 }

// kernel: multi_head_attention.5
= control target key start
LH: loop header
LB: loop body
LE: loop exit
PB: predicated region body
PF: predicated region fallthrough
CT: control target
= control target key end

     0   :  { %7 = vsyncpa [#allocation3], 0  ;;  %s321_s0 = inlined_call_operand.hbm [shape: f32[16,32], index: 0, kind: input, shape index: {}]   ;;  %s322_s1 = inlined_call_operand.hbm [shape: f32[32,32], index: 1, kind: input, shape index: {}]   ;;  %s323_s2 = inlined_call_operand.hbm [shape: f32[16,32], index: 2, kind: output, shape index: {}]  }
   0x1   :  { %8 = vsyncpa [#allocation6], 0 }
   0x2   :  { %9 = vsyncpa [#allocation4], 0  ;;  %s252_s9 = smov [#allocation2]   ;;  %s180_s13 = scalar_lea.hbm %s321_s0, 256 }
   0x3   :  { %s15_s10 = sshll.u32 %s252_s9, 4  ;;  %p181_p0 = scmp.ne.s32.totalorder %s321_s0, %s180_s13  ;;  %s16_s10 = int_to_ptr.vmem [resolvable:$true] %s15_s10 }
   0x4   :  { %p184_p1 = scmp.lt.u32.totalorder %s180_s13, %s321_s0 }
   0x6   :  { %p186_p2 = pnand %p184_p1, %p181_p0 }
   0x8   :  { %189 = shalt.err (!%p186_p2)
}
   0x9   :  { %s190_s18 = scalar_lea.vmem %s16_s10, 256  ;;  %p195_p4 = scmp.lt.s32.totalorder %s16_s10, %s16_s10 }
   0xa   :  { %p191_p3 = scmp.ne.s32.totalorder %s16_s10, %s190_s18  ;;  %p196_p5 = scmp.lt.s32.totalorder %s190_s18, %s190_s18 }
   0xc   :  { %p197_p6 = por %p196_p5, %p195_p4 }
   0xe   :  { %p198_p7 = pnand %p197_p6, %p191_p3 }
  0x10   :  { %201 = shalt.err (!%p198_p7)
}
  0x11   :  { %s253_s19 = smov 128   ;;  %s254_s20 = smov 8  }
  0x12   :  { %21 = dma.hbm_to_vmem [thread:$0]  %s321_s0, 256, %s16_s10, [#allocation3], %s253_s19, %s253_s19, %s254_s20  }
  0x13   :  { %s255_s23 = smov [#allocation5]   ;;  %s202_s27 = scalar_lea.hbm %s322_s1, 512 }
  0x14   :  { %s27_s24 = sshll.u32 %s255_s23, 4  ;;  %p203_p8 = scmp.ne.s32.totalorder %s322_s1, %s202_s27  ;;  %s28_s24 = int_to_ptr.vmem [resolvable:$true] %s27_s24 }
  0x15   :  { %p206_p9 = scmp.lt.u32.totalorder %s202_s27, %s322_s1 }
  0x17   :  { %p208_p10 = pnand %p206_p9, %p203_p8 }
  0x19   :  { %211 = shalt.err (!%p208_p10)
}
  0x1a   :  { %s212_s4 = scalar_lea.vmem %s28_s24, 512  ;;  %p217_p12 = scmp.lt.s32.totalorder %s28_s24, %s28_s24 }
  0x1b   :  { %p213_p11 = scmp.ne.s32.totalorder %s28_s24, %s212_s4  ;;  %p218_p13 = scmp.lt.s32.totalorder %s212_s4, %s212_s4 }
  0x1d   :  { %p219_p0 = por %p218_p13, %p217_p12 }
  0x1f   :  { %p220_p1 = pnand %p219_p0, %p213_p11 }
  0x21   :  { %223 = shalt.err (!%p220_p1)
}
  0x22   :  { %33 = dma.hbm_to_vmem [thread:$0]  %s322_s1, 512, %s28_s24, [#allocation6], %s253_s19, %s253_s19, %s254_s20  }
  0x23   :  { %246 = dma.done.wait [#allocation3], 256  }
  0x24   :  { %247 = vsyncadd [#allocation3], 4294967040 }
  0x25   :  { %248 = dma.done.wait [#allocation6], 512  }
  0x26   :  { %249 = vsyncadd [#allocation6], 4294966784  ;;  %vm46_vm0 = vcmask 261120   ;;  %v42_v0 = vld [vmem:[#allocation5] sm:$0xff]  ;;  %v43_v1 = vld [vmem:[#allocation5 + $0x8] sm:$0xff]  ;;  %s256_s1 = smov [#allocation7]  }
  0x27   :  { %v44_v2 = vld [vmem:[#allocation5 + $0x10] sm:$0xff]  ;;  %v167_v3 = vpack.c.bf16 %v43_v1, %v42_v0  ;;  %v45_v4 = vld [vmem:[#allocation5 + $0x18] sm:$0xff]  ;;  %s135_s6 = sshll.u32 %s256_s1, 4  ;;  %s136_s6 = int_to_ptr.vmem [resolvable:$true] %s135_s6 }
  0x28   :  { %v40_v5 = vld [vmem:[#allocation2] sm:$0xff]  ;;  %v171_v6 = vpack.c.bf16 %v45_v4, %v44_v2  ;;  %v41_v7 = vld [vmem:[#allocation2 + $0x8] sm:$0xff]  ;;  %s224_s7 = scalar_lea.vmem %s136_s6, 256  ;;  %p229_p3 = scmp.lt.s32.totalorder %s136_s6, %s136_s6 }
  0x29   :  { %164 = vmatprep.mubr.msk.f32.mxu0 %vm46_vm0, %v40_v5  ;;  %168 = vmatprep.subr.bf16.mxu0 %v167_v3  ;;  %p225_p2 = scmp.ne.s32.totalorder %s136_s6, %s224_s7  ;;  %p230_p4 = scmp.lt.s32.totalorder %s224_s7, %s224_s7 }
  0x2a   :  { %170 = vmatpush3.bf16.msra.mxu0 %v167_v3 }
  0x2b   :  { %172 = vmatprep.subr.bf16.mxu0 %v171_v6  ;;  %p231_p5 = por %p230_p4, %p229_p3 }
  0x2d   :  { %p232_p6 = pnand %p231_p5, %p225_p2 }
  0x2e   :  { %174 = vmatpush3.bf16.msra.mxu0 %v171_v6 }
  0x31   :  { %165 = vmatmul.mubr.msk.f32.vlgmr.msra.gmra.mrb[0].mxu0 %vm46_vm0, %v41_v7 }
 0x104   :  { %v166_v8 = vpop.f32.mrb[0].mxu0 }
 0x105   :  { %129 = vst.msk [vmem:[#allocation7 + $0x8] sm:$0xff] %vm46_vm0, %v166_v8  ;;  %v119_v9 = vpop.f32.mrb[1].mxu0 }
 0x106   :  { %128 = vst.msk [vmem:[#allocation7] sm:$0xff] %vm46_vm0, %v119_v9 }
 0x107   :  { %235 = shalt.err (!%p232_p6)
}
 0x108   :  { %s236_s10 = scalar_lea.hbm %s323_s2, 256 }
 0x109   :  { %p237_p7 = scmp.ne.s32.totalorder %s323_s2, %s236_s10  ;;  %p240_p8 = scmp.lt.u32.totalorder %s236_s10, %s323_s2 }
 0x10b   :  { %p242_p9 = pnand %p240_p8, %p237_p7 }
 0x10d   :  { %245 = shalt.err (!%p242_p9)
}
 0x10e   :  { %141 = dma.vmem_to_hbm [thread:$0]  %s136_s6, 256, %s323_s2, [#allocation4], %s253_s19, %s253_s19, %s254_s20  }
 0x10f   :  { %250 = dma.done.wait [#allocation4], 256  }
 0x110   :  { %251 = vsyncadd [#allocation4], 4294967040 }
 0x111   :  { %145 = vsyncpa [#allocation3], 1 }
 0x112   :  { %146 = vsyncpa [#allocation6], 1 }
 0x113   :  { %147 = vsyncpa [#allocation4], 1 }

// kernel: multi_head_attention.4
= control target key start
LH: loop header
LB: loop body
LE: loop exit
PB: predicated region body
PF: predicated region fallthrough
CT: control target
= control target key end

     0   :  { %s2047_s0 = inlined_call_operand.hbm [shape: f32[2,8,32], index: 0, kind: input, shape index: {}]   ;;  %s2048_s1 = inlined_call_operand.hbm [shape: f32[2,8,32], index: 1, kind: input, shape index: {}]   ;;  %s2049_s2 = inlined_call_operand.hbm [shape: f32[2,8,32], index: 2, kind: input, shape index: {}]   ;;  %s2050_s3 = inlined_call_operand.hbm [shape: f32[2,8,32], index: 3, kind: output, shape index: {}]  }
   0x1   :  { %2056 = sst [smem:[#allocation18_spill]] %s2048_s1 }
   0x2   :  { %8 = vsyncpa [#allocation6], 0 }
   0x3   :  { %10 = vsyncpa [#allocation6 + $0x1], 0 }
   0x4   :  { %11 = vsyncpa [#allocation9], 0 }
   0x5   :  { %13 = vsyncpa [#allocation9 + $0x1], 0 }
   0x6   :  { %14 = vsyncpa [#allocation7], 0 }
   0x7   :  { %16 = vsyncpa [#allocation7 + $0x1], 0  ;;  %s1682_s12 = smov 0   ;;  %s1684_s13 = smov 0  }
   0x8   :  { %s1686_s14 = smov 0   ;;  %s1688_s15 = smov 0  }
   0x9   :  { %s1690_s16 = smov 0   ;;  %s1692_s17 = smov 0  }
   0xa LB: > { %2057 = sst [smem:[#allocation15_spill]] %s1642_s16  ;;  %s1713_s18 = sadd.s32 4294967295, %s1646_s17   ;;  %s1646_s17 = sphi %s1692_s17, %s22_s17   ;;  %s1642_s16 = sphi %s1690_s16, %s2078_s16   ;;  %s1638_s15 = sphi %s1688_s15, %s2077_s15   ;;  %s1634_s14 = sphi %s1686_s14, %s2081_s14   ;;  %s1630_s13 = sphi %s1684_s13, %s2080_s13   ;;  %s1626_s12 = sphi %s1682_s12, %s2079_s12  }
   0xb   : > { %s1276_s19 = sadd.s32 4294967294, %s1646_s17   ;;  %s48_s20 = sadd.s32 1, %s1642_s16 }
   0xc   : > { %s57_s21 = sadd.s32 1, %s1634_s14  ;;  %p50_p0 = scmp.ge.s32.totalorder %s48_s20, 2 }
   0xd   : > { %p64_p1 = scmp.ne.s32.totalorder %s1634_s14, %s1630_s13  ;;  %p65_p2 = scmp.eq.s32.totalorder %s1646_s17, 0 }
   0xe   : > { %p70_p3 = scmp.ne.s32.totalorder %s1630_s13, %s1626_s12  ;;  %s2083_s20 = smov (%p50_p0, %s48_s20), 0 }
   0xf   : > { %2058 = sst [smem:[#allocation16_spill]] %s2083_s20  ;;  %p1725_p4 = por %p65_p2, %p64_p1 }
  0x10   : > { %p71_p5 = scmp.eq.s32.totalorder %s1713_s18, 0  ;;  %s52_s23 = ssub.s32 %s1642_s16, %s2083_s20 }
  0x11   : > { %p152_p6 = scmp.eq.s32.totalorder %s1713_s18, 1  ;;  %p55_p7 = scmp.eq.s32.totalorder %s52_s23, 0 }
  0x12   : > { %p1733_p8 = por %p71_p5, %p70_p3  ;;  %p158_p10 = scmp.eq.s32.totalorder %s1276_s19, 1 }
  0x13   : > { %p1737_p9 = por %p152_p6, %p64_p1  ;;  %p1384_p13 = scmp.lt.s32.totalorder %s1646_s17, 2 }
  0x14   : > { %s2060_s24 = scalar_select %p1733_p8, 1, 0 }
  0x15   : > { %s2061_s25 = scalar_select %p1737_p9, 1, 0 }
  0x16   : > { %s1742_s26 = scalar_select %p55_p7, %s1634_s14, %s57_s21  }
  0x17   : > { %p1744_p11 = por %p158_p10, %p70_p3  ;;  %s178_s28 = sand.u32 1, %s1634_s14  }
  0x18   : > { %2062 = sst [smem:[#allocation17_spill]] %s1742_s26  ;;  %s1753_s29 = sshll.u32 %s178_s28, 3 }
  0x19   : > { %s2063_s27 = scalar_select %p1744_p11, 1, 0 }
  0x1a   : > { %s1756_s30 = sshll.u32 %s1642_s16, 7  ;;  %p1760_p0 = pnand %p1384_p13, %p1725_p4 }
  0x1b   : > { %s197_s5 = sand.u32 1, %s1646_s17   ;;  %s2065_s1 = sld [smem:[#allocation18_spill]] }
  0x1c   : > { %s2064_s4 = scalar_select %p1760_p0, 1, 0 }
  0x1d   : > { %s201_s9 = scalar_lea.vmem [#allocation8], %s1753_s29  ;;  %s1776_s11 = scalar_lea.sflag [#allocation9], %s197_s5 }
  0x1e   : > { %s209_s10 = sshll.u32 %s201_s9, 4  ;;  %p1782_p4 = pneg %p1760_p0  ;;  %s1773_s10 = int_to_ptr.vmem [resolvable:$true] %s209_s10 }
  0x21   : > { %s1769_s8 = scalar_lea.hbm %s2065_s1, %s1756_s30  ;;  %s1475_s6 = scalar_lea.hbm %s2065_s1, 256 }
  0x22   : > { %s1470_s19 = scalar_lea.hbm %s1769_s8, 128  ;;  %p1476_p7 = scmp.lt.u32.totalorder %s1769_s8, %s2065_s1 }
  0x23   : > { %p1471_p3 = scmp.ne.s32.totalorder %s1769_s8, %s1470_s19  ;;  %p1477_p10 = scmp.lt.u32.totalorder %s1475_s6, %s1470_s19 }
  0x24   : > { %p1479_p12 = scmp.lt.u32.totalorder %s1470_s19, %s1769_s8 }
  0x25   : > { %p1473_p5 = pnand %p1782_p4, %p1471_p3  ;;  %p1478_p13 = por %p1477_p10, %p1476_p7 }
  0x27   : > { %p1474_p6 = pneg %p1473_p5  ;;  %p1480_p1 = por %p1479_p12, %p1478_p13 }
  0x29   : > { %p1481_p2 = pnand %p1480_p1, %p1474_p6 }
  0x2b   : > { %1484 = shalt.err (!%p1481_p2)
}
  0x2c   : > { %s1485_s5 = scalar_lea.vmem %s1773_s10, 128  ;;  %s1648_s22 = smov [#allocation8]  }
  0x2d   : > { %p1486_p3 = scmp.ne.s32.totalorder %s1773_s10, %s1485_s5  ;;  %s1490_s23 = sshll.u32 %s1648_s22, 4  ;;  %s1491_s23 = int_to_ptr.vmem [resolvable:$false] %s1490_s23 }
  0x2e   : > { %s1492_s7 = scalar_lea.vmem %s1491_s23, 256  ;;  %p1493_p9 = scmp.lt.s32.totalorder %s1773_s10, %s1491_s23 }
  0x2f   : > { %p1488_p5 = pnand %p1486_p3, %p1782_p4  ;;  %p1494_p8 = scmp.lt.s32.totalorder %s1492_s7, %s1485_s5 }
  0x31   : > { %p1489_p11 = pneg %p1488_p5  ;;  %p1495_p7 = por %p1494_p8, %p1493_p9 }
  0x33   : > { %p1496_p10 = pnand %p1495_p7, %p1489_p11 }
  0x35   : > { %1499 = shalt.err (!%p1496_p10)
}
  0x36   : > { %1376 = dma.hbm_to_vmem [thread:$0]  (!%p1760_p0), %s1769_s8, 128, %s1773_s10, %s1776_s11  }
  0x37   : > { %p2067_p12 = scmp.lt.s32.totalorder %s1646_s17, 3  ;;  %p2068_p1 = scmp.ge.s32.totalorder %s1646_s17, 1 }
  0x38   : > { %s1818_s5 = scalar_lea.hbm %s2047_s0, %s1756_s30  ;;  %s182_s22 = scalar_lea.vmem [#allocation5], %s1753_s29 }
  0x39   : > { %p1810_p2 = pnand %p2068_p1, %p2067_p12  ;;  %s190_s23 = sshll.u32 %s182_s22, 4  ;;  %s1821_s23 = int_to_ptr.vmem [resolvable:$true] %s190_s23 }
  0x3a   : > { %s1827_s7 = scalar_lea.hbm %s2049_s2, %s1756_s30  ;;  %s179_s1 = scalar_lea.sflag [#allocation6], %s178_s28 }
  0x3b   : > { %s2069_s19 = scalar_select %p1810_p2, 1, 0 }
  0x3c   : > { %s1500_s20 = scalar_lea.hbm %s1818_s5, 128  ;;  %s1505_s16 = scalar_lea.hbm %s2047_s0, 256 }
  0x3d   : > { %p1501_p8 = scmp.ne.s32.totalorder %s1818_s5, %s1500_s20  ;;  %p1506_p6 = scmp.lt.u32.totalorder %s1818_s5, %s2047_s0 }
  0x3e   : > { %p1507_p13 = scmp.lt.u32.totalorder %s1505_s16, %s1500_s20  ;;  %p1509_p5 = scmp.lt.u32.totalorder %s1500_s20, %s1818_s5 }
  0x3f   : > { %p1503_p9 = pnand %p1501_p8, %p1782_p4 }
  0x40   : > { %p1508_p3 = por %p1507_p13, %p1506_p6 }
  0x41   : > { %p1504_p11 = pneg %p1503_p9 }
  0x42   : > { %p1510_p7 = por %p1509_p5, %p1508_p3 }
  0x44   : > { %p1511_p10 = pnand %p1510_p7, %p1504_p11 }
  0x46   : > { %1514 = shalt.err (!%p1511_p10)
}
  0x47   : > { %s1515_s28 = scalar_lea.vmem %s1821_s23, 128  ;;  %s1649_s30 = smov [#allocation5]  }
  0x48   : > { %p1516_p12 = scmp.ne.s32.totalorder %s1821_s23, %s1515_s28  ;;  %s1520_s8 = sshll.u32 %s1649_s30, 4  ;;  %s1521_s8 = int_to_ptr.vmem [resolvable:$false] %s1520_s8 }
  0x49   : > { %s1522_s26 = scalar_lea.vmem %s1521_s8, 256  ;;  %p1523_p9 = scmp.lt.s32.totalorder %s1821_s23, %s1521_s8 }
  0x4a   : > { %p1518_p1 = pnand %p1516_p12, %p1782_p4  ;;  %p1524_p2 = scmp.lt.s32.totalorder %s1522_s26, %s1515_s28 }
  0x4c   : > { %p1519_p8 = pneg %p1518_p1  ;;  %p1525_p6 = por %p1524_p2, %p1523_p9 }
  0x4e   : > { %p1526_p13 = pnand %p1525_p6, %p1519_p8 }
  0x50   : > { %1529 = shalt.err (!%p1526_p13)
}
  0x51   : > { %1373 = dma.hbm_to_vmem [thread:$0]  (!%p1760_p0), %s1818_s5, 128, %s1821_s23, %s179_s1  }
  0x52   : > { %s220_s16 = scalar_lea.vmem [#allocation10], %s1753_s29  ;;  %s1530_s10 = scalar_lea.hbm %s1827_s7, 128 }
  0x53   : > { %s228_s20 = sshll.u32 %s220_s16, 4  ;;  %p1531_p11 = scmp.ne.s32.totalorder %s1827_s7, %s1530_s10  ;;  %s229_s20 = int_to_ptr.vmem [resolvable:$true] %s228_s20 }
  0x54   : > { %s1535_s22 = scalar_lea.hbm %s2049_s2, 256  ;;  %p1536_p5 = scmp.lt.u32.totalorder %s1827_s7, %s2049_s2 }
  0x55   : > { %p1533_p2 = pnand %p1531_p11, %p1782_p4  ;;  %p1537_p7 = scmp.lt.u32.totalorder %s1535_s22, %s1530_s10 }
  0x56   : > { %p1539_p12 = scmp.lt.u32.totalorder %s1530_s10, %s1827_s7 }
  0x57   : > { %p1534_p3 = pneg %p1533_p2  ;;  %p1538_p10 = por %p1537_p7, %p1536_p5 }
  0x59   : > { %p1540_p1 = por %p1539_p12, %p1538_p10 }
  0x5b   : > { %p1541_p8 = pnand %p1540_p1, %p1534_p3 }
  0x5d   : > { %1544 = shalt.err (!%p1541_p8)
}
  0x5e   : > { %s1545_s1 = scalar_lea.vmem %s229_s20, 128  ;;  %s1650_s29 = smov [#allocation10]  }
  0x5f   : > { %p1546_p9 = scmp.ne.s32.totalorder %s229_s20, %s1545_s1  ;;  %s1550_s5 = sshll.u32 %s1650_s29, 4  ;;  %s1551_s5 = int_to_ptr.vmem [resolvable:$false] %s1550_s5 }
  0x60   : > { %s1552_s23 = scalar_lea.vmem %s1551_s5, 256  ;;  %p1553_p11 = scmp.lt.s32.totalorder %s229_s20, %s1551_s5 }
  0x61   : > { %p1548_p6 = pnand %p1546_p9, %p1782_p4  ;;  %p1554_p2 = scmp.lt.s32.totalorder %s1552_s23, %s1545_s1 }
  0x63   : > { %p1549_p13 = pneg %p1548_p6  ;;  %p1555_p0 = por %p1554_p2, %p1553_p11 }
  0x65   : > { %p1556_p5 = pnand %p1555_p0, %p1549_p13 }
  0x67   : > { %1559 = shalt.err (!%p1556_p5)
}
  0x68   : > { %p2070_p7 = scmp.ne.s32.totalorder %s2064_s4, 0  ;;  %p2071_p3 = scmp.ne.s32.totalorder %s2069_s19, 0 }
  0x69   : > { %s1874_s21 = sand.u32 (!%p2071_p3), 1, %s1630_s13   ;;  %p2072_p0 = scmp.ne.s32.totalorder (!%p2071_p3), %s2060_s24, 0 }
  0x6a   : > { %1379 = dma.hbm_to_vmem [thread:$0]  (!%p2070_p7), %s1827_s7, 128, %s229_s20, %s1776_s11  }
  0x6b   : > { %237 = sbr.rel (%p2071_p3) target bundleno = 1564 (0x61c), region = 32  ;;  %s1877_s8 = sshll.u32 (!%p2071_p3), %s1874_s21, 3 }
  0x6c   : > { %s240_s26 = scalar_lea.sflag (!%p2071_p3), [#allocation6], %s1874_s21  ;;  %s243_s16 = scalar_lea.vmem (!%p2071_p3), [#allocation5], %s1877_s8 }
  0x72   : > { %1613 = dma.done.wait (%p2072_p0), %s240_s26, 128  }
  0x73   : > { %1615 = vsyncadd (%p2072_p0), %s240_s26, 4294967168  ;;  %s248_s4 = sand.u32 1, %s1713_s18   ;;  %s252_s19 = scalar_lea.vmem [#allocation8], %s1877_s8 }
  0x74   : > { %s249_s11 = scalar_lea.sflag [#allocation9], %s248_s4 }
  0x75   : > { %1617 = dma.done.wait (%p2072_p0), %s249_s11, 256  }
  0x76   : > { %1619 = vsyncadd (%p2072_p0), %s249_s11, 4294967040  ;;  %vm307_vm0 = vcmask 64512   ;;  %v1651_v0 = vmov 0.0   ;;  %vm1652_vm1 = vmmov 0   ;;  %v313_v1 = vld [vmem:[%s252_s19] sm:$0xff]  ;;  %v312_v2 = vld [vmem:[%s243_s16] sm:$0xff] }
  0x77   : > { %1322 = vmatprep.subr.mxu0 %v1651_v0  ;;  %308 = vst.msk [vmem:[#allocation4] sm:$0xff] %vm307_vm0, %v1651_v0  ;;  %309 = vst.msk [vmem:[#allocation4 + $0x8] sm:$0xff] %vm307_vm0, %v1651_v0  ;;  %1324 = vmatprep.mubr.msk.f32.mxu0 %vm1652_vm1, %v1651_v0  ;;  %vm298_vm2 = vcmask 7168   ;;  %v1653_v3 = vmov -inf   ;;  %v1654_v8 = vmov 0   ;;  %s1655_s18 = smov 120  }
  0x78   : > { %310 = vst.msk [vmem:[#allocation4 + $0x10] sm:$0xff] %vm307_vm0, %v1651_v0  ;;  %311 = vst.msk [vmem:[#allocation4 + $0x18] sm:$0xff] %vm307_vm0, %v1651_v0  ;;  %1327 = vmatprep.subr.mxu1 %v1651_v0  ;;  %1329 = vmatprep.mubr.msk.f32.mxu1 %vm1652_vm1, %v1651_v0  ;;  %s1656_s24 = smov 112   ;;  %s1657_s7 = smov 104   ;;  %vm1126_vm3 = vcmask 130048   ;;  %vm1128_vm4 = vcmask 195584  }
  0x79   : > { %1323 = vmatpush3.xpose.msk.msra.mxu0 %vm307_vm0, %v313_v1  ;;  %299 = vst.msk [vmem:[#allocation2] sm:$0xff] %vm298_vm2, %v1653_v3  ;;  %300 = vst.msk [vmem:[#allocation2 + $0x8] sm:$0xff] %vm298_vm2, %v1653_v3  ;;  %1444 = vset.pattern.permute.xlu0 %v1654_v8  ;;  %s261_s20 = scalar_lea.vmem [#allocation10], %s1877_s8  ;;  %s1658_s10 = smov 8   ;;  %vm1130_vm5 = vcmask 261120  }
  0x7a   : > { %1337 = vmatprep.subr.mxu0 %v1651_v0  ;;  %301 = vst.msk [vmem:[#allocation2 + $0x10] sm:$0xff] %vm298_vm2, %v1653_v3  ;;  %302 = vst.msk [vmem:[#allocation2 + $0x18] sm:$0xff] %vm298_vm2, %v1653_v3  ;;  %1445 = vset.pattern.permute.xlu1 %v1654_v8  ;;  %v314_v13 = vld [vmem:[%s261_s20] sm:$0xff]  ;;  %s1659_s6 = smov 16   ;;  %s1660_s9 = smov 24  }
  0x7b   : > { %303 = vst.msk [vmem:[#allocation3] sm:$0xff] %vm298_vm2, %v1651_v0  ;;  %304 = vst.msk [vmem:[#allocation3 + $0x8] sm:$0xff] %vm298_vm2, %v1651_v0  ;;  %502 = vrot.lane.b32.xlu1 %v313_v1, %s1655_s18  ;;  %1328 = vmatpush3.msra.mxu1 %v314_v13  ;;  %s1303_s22 = sshll.u32 %s1638_s15, 7  ;;  %s293_s28 = scalar_lea.vmem [#allocation11], %s1877_s8 }
  0x7c   : > { %1325 = vmatmul.mubr.msk.f32.vlgmr.msra.gmra.mrb[0].mxu0 %vm307_vm0, %v312_v2  ;;  %305 = vst.msk [vmem:[#allocation3 + $0x10] sm:$0xff] %vm298_vm2, %v1651_v0  ;;  %306 = vst.msk [vmem:[#allocation3 + $0x18] sm:$0xff] %vm298_vm2, %v1651_v0  ;;  %1332 = vmatprep.subr.mxu1 %v1651_v0  ;;  %s1147_s30 = sshll.u32 %s293_s28, 4  ;;  %s1998_s5 = scalar_lea.hbm %s2050_s3, %s1303_s22  ;;  %s2000_s30 = int_to_ptr.vmem [resolvable:$true] %s1147_s30 }
  0x7d   : > { %1339 = vmatprep.mubr.msk.f32.mxu0 %vm1652_vm1, %v1651_v0  ;;  %s1133_s15 = scalar_lea.sflag [#allocation7], %s1874_s21  ;;  %s1560_s23 = scalar_lea.vmem %s2000_s30, 128 }
  0x7e   : > { %p1561_p4 = scmp.ne.s32.totalorder %s2000_s30, %s1560_s23  ;;  %p2073_p10 = scmp.ne.s32.totalorder %s2061_s25, 0 }
  0x7f   : > { %500 = vrot.lane.b32.xlu1 %v312_v2, %s1655_s18  ;;  %s1661_s8 = smov [#allocation11]  }
  0x80   : > { %v1929_v9 = vld [vmem:[#allocation2] sm:$0xff]  ;;  %v580_v38 = vld [vmem:[#allocation2 + $0x8] sm:$0xff]  ;;  %p1562_p12 = pnand %p1561_p4, %p2073_p10  ;;  %s1564_s26 = sshll.u32 %s1661_s8, 4  ;;  %s1565_s26 = int_to_ptr.vmem [resolvable:$false] %s1564_s26 }
  0x81   : > { %v772_v41 = vld [vmem:[#allocation2 + $0x10] sm:$0xff]  ;;  %v963_v45 = vld [vmem:[#allocation2 + $0x18] sm:$0xff]  ;;  %s1566_s16 = scalar_lea.vmem %s1565_s26, 256  ;;  %p1567_p8 = scmp.lt.s32.totalorder %s2000_s30, %s1565_s26 }
  0x82   : > { %p1563_p1 = pneg %p1562_p12  ;;  %p1568_p9 = scmp.lt.s32.totalorder %s1566_s16, %s1560_s23 }
  0x83   : > { %694 = vrot.lane.b32.xlu1 %v313_v1, %s1656_s24 }
  0x84   : > { %p1569_p6 = por %p1568_p9, %p1567_p8 }
  0x86   : > { %p1570_p13 = pnand %p1569_p6, %p1563_p1 }
  0x87   : > { %692 = vrot.lane.b32.xlu1 %v312_v2, %s1656_s24 }
  0x8b   : > { %885 = vrot.lane.b32.xlu1 %v313_v1, %s1657_s7 }
  0x8f   : > { %883 = vrot.lane.b32.xlu1 %v312_v2, %s1657_s7 }
  0xed   : > { %v503_v14 = vpop.permute.xlu1 %502 }
  0xf1   : > { %v501_v17 = vpop.permute.xlu1 %500 }
  0xf5   : > { %v695_v19 = vpop.permute.xlu1 %694 }
  0xf9   : > { %v693_v20 = vpop.permute.xlu1 %692 }
  0xfd   : > { %v886_v22 = vpop.permute.xlu1 %885 }
 0x101   : > { %v884_v23 = vpop.permute.xlu1 %883 }
 0x14f   : > { %v388_v4 = vpop.f32.mrb[0].mxu0 }
 0x150   : > { %v392_v5 = vmul.f32 0.35355338, %v388_v4  ;;  %v1326_v6 = vpop.f32.mrb[1].mxu0 }
 0x152   : > { %v394_v7 = vsel %vm307_vm0, %v392_v5, -inf }
 0x153   : > { %395 = vmax.xlane.f32.xlu0 %v394_v7 }
 0x1e0   : > { %v396_v10 = vpop.xlane.xlu0 %395 }
 0x1e1   : > { %v1932_v11 = vmax.f32 %v1929_v9, %v396_v10 }
 0x1e3   : > { %v398_v12 = vsub.f32 %v1929_v9, %v1932_v11  ;;  %499 = vst.msk [vmem:[#allocation2] sm:$0xff] %vm298_vm2, %v1932_v11  ;;  %403 = vperm.xlu0 %1444, %v1932_v11  }
 0x1e5   : > { %v399_v7 = vmul.f32 1.442695, %v398_v12  ;;  %v597_v12 = vld [vmem:[#allocation3 + $0x8] sm:$0xff] }
 0x262   : > { %v404_v15 = vpop.permute.xlu0 %403 }
 0x263   : > { %v406_v16 = vsub.f32 %v392_v5, %v404_v15 }
 0x265   : > { %v407_v18 = vmul.f32 1.442695, %v406_v16  ;;  %v409_v16 = vld [vmem:[#allocation3] sm:$0xff] }
 0x267   : > { %1446 = vpow2.f32 %v407_v18 }
 0x271   : > { %v1447_v21 = vpop.eup %1446 }
 0x272   : > { %1330 = vmatmul.mubr.msk.f32.vlgmr.msra.gmra.mrb[0].mxu1 %vm307_vm0, %v1447_v21  ;;  %v411_v50 = vsel %vm307_vm0, %v1447_v21, 0.0 }
 0x273   : > { %1333 = vmatpush3.xpose.msk.msra.mxu1 %vm307_vm0, %v503_v14  ;;  %1334 = vmatprep.mubr.msk.f32.mxu1 %vm1652_vm1, %v1651_v0 }
 0x274   : > { %1342 = vmatprep.subr.mxu1 %v1651_v0 }
 0x276   : > { %1335 = vmatmul.mubr.msk.f32.vlgmr.msra.gmra.mrb[2].mxu1 %vm307_vm0, %v501_v17 }
 0x277   : > { %1343 = vmatpush3.xpose.msk.msra.mxu1 %vm307_vm0, %v695_v19  ;;  %1344 = vmatprep.mubr.msk.f32.mxu1 %vm1652_vm1, %v1651_v0 }
 0x278   : > { %1352 = vmatprep.subr.mxu1 %v1651_v0 }
 0x27a   : > { %1345 = vmatmul.mubr.msk.f32.vlgmr.msra.gmra.mrb[4].mxu1 %vm307_vm0, %v693_v20 }
 0x27b   : > { %1353 = vmatpush3.xpose.msk.msra.mxu1 %vm307_vm0, %v886_v22  ;;  %1354 = vmatprep.mubr.msk.f32.mxu1 %vm1652_vm1, %v1651_v0  ;;  %v789_v22 = vld [vmem:[#allocation3 + $0x10] sm:$0xff] }
 0x27e   : > { %1355 = vmatmul.mubr.msk.f32.vlgmr.msra.gmra.mrb[6].mxu1 %vm307_vm0, %v884_v23 }
 0x345   : > { %v1956_v24 = vpop.f32.mrb[0].mxu1 }
 0x346   : > { %v1331_v25 = vpop.f32.mrb[1].mxu1 }
 0x349   : > { %v574_v26 = vpop.f32.mrb[2].mxu1 }
 0x34a   : > { %v578_v27 = vmul.f32 0.35355338, %v574_v26  ;;  %v1336_v28 = vpop.f32.mrb[3].mxu1 }
 0x34c   : > { %v581_v29 = vsel %vm307_vm0, %v578_v27, -inf }
 0x34d   : > { %582 = vmax.xlane.f32.xlu1 %v581_v29  ;;  %v766_v30 = vpop.f32.mrb[4].mxu1 }
 0x34e   : > { %v770_v31 = vmul.f32 0.35355338, %v766_v30  ;;  %v1346_v32 = vpop.f32.mrb[5].mxu1 }
 0x34f   : > { %v417_v32 = vld [vmem:[#allocation4] sm:$0xff] }
 0x350   : > { %v773_v33 = vsel %vm307_vm0, %v770_v31, -inf }
 0x351   : > { %774 = vmax.xlane.f32.xlu0 %v773_v33  ;;  %v957_v34 = vpop.f32.mrb[6].mxu1 }
 0x352   : > { %v961_v35 = vmul.f32 0.35355338, %v957_v34  ;;  %v1356_v36 = vpop.f32.mrb[7].mxu1 }
 0x354   : > { %v964_v37 = vsel %vm307_vm0, %v961_v35, -inf }
 0x355   : > { %965 = vmax.xlane.f32.xlu1 %v964_v37 }
 0x3da   : > { %v583_v39 = vpop.xlane.xlu1 %582 }
 0x3db   : > { %v584_v40 = vmax.f32 %v580_v38, %v583_v39 }
 0x3dd   : > { %v585_v42 = vsub.f32 %v580_v38, %v584_v40  ;;  %691 = vst.msk [vmem:[#allocation2 + $0x8] sm:$0xff] %vm298_vm2, %v584_v40  ;;  %590 = vperm.xlu1 %1445, %v584_v40  }
 0x3de   : > { %v775_v43 = vpop.xlane.xlu0 %774 }
 0x3df   : > { %v776_v44 = vmax.f32 %v772_v41, %v775_v43  ;;  %v586_v6 = vmul.f32 1.442695, %v585_v42  ;;  %v605_v43 = vld [vmem:[#allocation4 + $0x8] sm:$0xff] }
 0x3e1   : > { %v777_v46 = vsub.f32 %v772_v41, %v776_v44  ;;  %882 = vst.msk [vmem:[#allocation2 + $0x10] sm:$0xff] %vm298_vm2, %v776_v44  ;;  %782 = vperm.xlu0 %1444, %v776_v44  }
 0x3e2   : > { %v966_v47 = vpop.xlane.xlu1 %965 }
 0x3e3   : > { %v967_v48 = vmax.f32 %v963_v45, %v966_v47  ;;  %v778_v8 = vmul.f32 1.442695, %v777_v46 }
 0x3e5   : > { %v968_v49 = vsub.f32 %v963_v45, %v967_v48  ;;  %1073 = vst.msk [vmem:[#allocation2 + $0x18] sm:$0xff] %vm298_vm2, %v967_v48  ;;  %973 = vperm.xlu1 %1445, %v967_v48   ;;  %v797_v45 = vld [vmem:[#allocation4 + $0x10] sm:$0xff] }
 0x3e7   : > { %v969_v10 = vmul.f32 1.442695, %v968_v49 }
 0x3e9   : > { %613 = vrot.lane.b32.xlu1 %v314_v13, %s1655_s18 }
 0x3ed   : > { %804 = vrot.lane.b32.xlu1 %v314_v13, %s1656_s24 }
 0x3f1   : > { %995 = vrot.lane.b32.xlu1 %v314_v13, %s1657_s7 }
 0x415   : > { %412 = vadd.xlane.f32.xlu1 %v411_v50  ;;  %v988_v50 = vld [vmem:[#allocation4 + $0x18] sm:$0xff] }
 0x45c   : > { %v591_v51 = vpop.permute.xlu1 %590 }
 0x45d   : > { %v593_v52 = vsub.f32 %v578_v27, %v591_v51  ;;  %v980_v27 = vld [vmem:[#allocation3 + $0x18] sm:$0xff] }
 0x45f   : > { %v594_v53 = vmul.f32 1.442695, %v593_v52 }
 0x460   : > { %v783_v54 = vpop.permute.xlu0 %782 }
 0x461   : > { %1448 = vpow2.f32 %v594_v53  ;;  %v785_v55 = vsub.f32 %v770_v31, %v783_v54 }
 0x463   : > { %v786_v56 = vmul.f32 1.442695, %v785_v55 }
 0x464   : > { %v974_v57 = vpop.permute.xlu1 %973 }
 0x465   : > { %1450 = vpow2.f32 %v786_v56  ;;  %v976_v58 = vsub.f32 %v961_v35, %v974_v57 }
 0x467   : > { %v977_v59 = vmul.f32 1.442695, %v976_v58 }
 0x468   : > { %v614_v60 = vpop.permute.xlu1 %613 }
 0x469   : > { %1452 = vpow2.f32 %v977_v59  ;;  %1338 = vmatpush3.msra.mxu0 %v614_v60 }
 0x46a   : > { %1347 = vmatprep.subr.mxu0 %v1651_v0  ;;  %1454 = vpow2.f32 %v586_v6 }
 0x46b   : > { %v1449_v61 = vpop.eup %1448  ;;  %1456 = vpow2.f32 %v399_v7 }
 0x46c   : > { %1340 = vmatmul.mubr.msk.f32.vlgmr.msra.gmra.mrb[2].mxu0 %vm307_vm0, %v1449_v61  ;;  %v599_v62 = vsel %vm307_vm0, %v1449_v61, 0.0  ;;  %v805_v63 = vpop.permute.xlu1 %804  ;;  %1458 = vpow2.f32 %v778_v8 }
 0x46d   : > { %600 = vadd.xlane.f32.xlu0 %v599_v62  ;;  %1348 = vmatpush3.msra.mxu0 %v805_v63  ;;  %1460 = vpow2.f32 %v969_v10 }
 0x46e   : > { %1349 = vmatprep.mubr.msk.f32.mxu0 %vm1652_vm1, %v1651_v0  ;;  %1357 = vmatprep.subr.mxu0 %v1651_v0 }
 0x46f   : > { %v1451_v1 = vpop.eup %1450 }
 0x470   : > { %1350 = vmatmul.mubr.msk.f32.vlgmr.msra.gmra.mrb[4].mxu0 %vm307_vm0, %v1451_v1  ;;  %v791_v2 = vsel %vm307_vm0, %v1451_v1, 0.0  ;;  %v996_v3 = vpop.permute.xlu1 %995 }
 0x471   : > { %792 = vadd.xlane.f32.xlu0 %v791_v2  ;;  %1358 = vmatpush3.msra.mxu0 %v996_v3 }
 0x472   : > { %1359 = vmatprep.mubr.msk.f32.mxu0 %vm1652_vm1, %v1651_v0 }
 0x473   : > { %v1453_v4 = vpop.eup %1452 }
 0x474   : > { %1360 = vmatmul.mubr.msk.f32.vlgmr.msra.gmra.mrb[6].mxu0 %vm307_vm0, %v1453_v4  ;;  %v982_v5 = vsel %vm307_vm0, %v1453_v4, 0.0  ;;  %v1455_v13 = vpop.eup %1454 }
 0x475   : > { %983 = vadd.xlane.f32.xlu1 %v982_v5  ;;  %v1457_v14 = vpop.eup %1456  ;;  %v598_v20 = vmul.f32 %v1455_v13, %v597_v12 }
 0x476   : > { %v1459_v0 = vpop.eup %1458  ;;  %v410_v17 = vmul.f32 %v1457_v14, %v409_v16 }
 0x477   : > { %v1461_v15 = vpop.eup %1460  ;;  %v790_v25 = vmul.f32 %v1459_v0, %v789_v22 }
 0x478   : > { %v981_v29 = vmul.f32 %v1461_v15, %v980_v27 }
 0x486   : > { %608 = vperm.xlu1 %1445, %v1455_v13  }
 0x487   : > { %420 = vperm.xlu0 %1444, %v1457_v14  }
 0x48a   : > { %800 = vperm.xlu1 %1445, %v1459_v0  }
 0x48b   : > { %991 = vperm.xlu0 %1444, %v1461_v15  }
 0x4a2   : > { %v413_v18 = vpop.xlane.xlu1 %412 }
 0x4a3   : > { %v414_v19 = vadd.f32 %v413_v18, %v410_v17 }
 0x4a5   : > { %416 = vst.msk [vmem:[#allocation3] sm:$0xff] %vm298_vm2, %v414_v19 }
 0x4ac   : > { %v1077_v9 = vld [vmem:[#allocation3] sm:$0xff] }
 0x4ad   : > { %1462 = vrcp.f32 %v1077_v9 }
 0x4b7   : > { %v1463_v11 = vpop.eup %1462 }
 0x4b8   : > { %1082 = vperm.xlu1 %1445, %v1463_v11  }
 0x4fa   : > { %v601_v21 = vpop.xlane.xlu0 %600 }
 0x4fb   : > { %v602_v23 = vadd.f32 %v601_v21, %v598_v20 }
 0x4fd   : > { %603 = vst.msk [vmem:[#allocation3 + $0x8] sm:$0xff] %vm298_vm2, %v602_v23 }
 0x4fe   : > { %v793_v26 = vpop.xlane.xlu0 %792 }
 0x4ff   : > { %v794_v28 = vadd.f32 %v793_v26, %v790_v25 }
 0x501   : > { %795 = vst.msk [vmem:[#allocation3 + $0x10] sm:$0xff] %vm298_vm2, %v794_v28 }
 0x502   : > { %v984_v30 = vpop.xlane.xlu1 %983 }
 0x503   : > { %v985_v31 = vadd.f32 %v984_v30, %v981_v29 }
 0x504   : > { %v1086_v33 = vld [vmem:[#allocation3 + $0x8] sm:$0xff] }
 0x505   : > { %986 = vst.msk [vmem:[#allocation3 + $0x18] sm:$0xff] %vm298_vm2, %v985_v31  ;;  %1464 = vrcp.f32 %v1086_v33 }
 0x506   : > { %v421_v34 = vpop.permute.xlu0 %420  ;;  %v609_v42 = vpop.permute.xlu1 %608 }
 0x507   : > { %v423_v35 = vmul.f32 %v421_v34, %v417_v32  ;;  %v611_v44 = vmul.f32 %v609_v42, %v605_v43 }
 0x508   : > { %v1095_v36 = vld [vmem:[#allocation3 + $0x10] sm:$0xff] }
 0x509   : > { %v497_v37 = vadd.f32 %v1956_v24, %v423_v35  ;;  %1466 = vrcp.f32 %v1095_v36 }
 0x50a   : > { %v801_v46 = vpop.permute.xlu1 %800  ;;  %v992_v51 = vpop.permute.xlu0 %991 }
 0x50b   : > { %498 = vst.msk [vmem:[#allocation4] sm:$0xff] %vm307_vm0, %v497_v37  ;;  %v803_v24 = vmul.f32 %v801_v46, %v797_v45  ;;  %v994_v55 = vmul.f32 %v992_v51, %v988_v50 }
 0x50c   : > { %v1104_v38 = vld [vmem:[#allocation3 + $0x18] sm:$0xff] }
 0x50d   : > { %1468 = vrcp.f32 %v1104_v38 }
 0x50f   : > { %v1465_v39 = vpop.eup %1464 }
 0x510   : > { %1091 = vperm.xlu0 %1444, %v1465_v39  }
 0x512   : > { %v1079_v6 = vld [vmem:[#allocation4] sm:$0xff] }
 0x513   : > { %v1467_v40 = vpop.eup %1466 }
 0x514   : > { %1100 = vperm.xlu1 %1445, %v1467_v40  }
 0x517   : > { %v1469_v41 = vpop.eup %1468 }
 0x518   : > { %1109 = vperm.xlu0 %1444, %v1469_v41  }
 0x537   : > { %v1083_v59 = vpop.permute.xlu1 %1082 }
 0x538   : > { %v1085_v8 = vmul.f32 %v1083_v59, %v1079_v6 }
 0x53f   : > { %v685_v47 = vpop.f32.mrb[2].mxu0 }
 0x540   : > { %v689_v48 = vadd.f32 %v685_v47, %v611_v44  ;;  %v1341_v49 = vpop.f32.mrb[3].mxu0 }
 0x542   : > { %690 = vst.msk [vmem:[#allocation4 + $0x8] sm:$0xff] %vm307_vm0, %v689_v48 }
 0x543   : > { %v876_v52 = vpop.f32.mrb[4].mxu0 }
 0x544   : > { %v880_v53 = vadd.f32 %v876_v52, %v803_v24  ;;  %v1351_v54 = vpop.f32.mrb[5].mxu0 }
 0x546   : > { %881 = vst.msk [vmem:[#allocation4 + $0x10] sm:$0xff] %vm307_vm0, %v880_v53 }
 0x547   : > { %v1067_v56 = vpop.f32.mrb[6].mxu0 }
 0x548   : > { %v1071_v57 = vadd.f32 %v1067_v56, %v994_v55  ;;  %v1361_v58 = vpop.f32.mrb[7].mxu0 }
 0x549   : > { %v1088_v60 = vld [vmem:[#allocation4 + $0x8] sm:$0xff] }
 0x54a   : > { %1072 = vst.msk [vmem:[#allocation4 + $0x18] sm:$0xff] %vm307_vm0, %v1071_v57 }
 0x54d   : > { %v1097_v63 = vld [vmem:[#allocation4 + $0x10] sm:$0xff] }
 0x551   : > { %v1106_v3 = vld [vmem:[#allocation4 + $0x18] sm:$0xff] }
 0x58f   : > { %v1092_v61 = vpop.permute.xlu0 %1091 }
 0x590   : > { %v1094_v62 = vmul.f32 %v1092_v61, %v1088_v60 }
 0x592   : > { %1114 = vrot.lane.b32.xlu1 %v1094_v62, %s1658_s10 }
 0x593   : > { %v1101_v1 = vpop.permute.xlu1 %1100 }
 0x594   : > { %v1103_v2 = vmul.f32 %v1101_v1, %v1097_v63 }
 0x596   : > { %1118 = vrot.lane.b32.xlu0 %v1103_v2, %s1659_s6 }
 0x597   : > { %v1110_v4 = vpop.permute.xlu0 %1109 }
 0x598   : > { %v1112_v5 = vmul.f32 %v1110_v4, %v1106_v3 }
 0x59a   : > { %1122 = vrot.lane.b32.xlu1 %v1112_v5, %s1660_s9 }
 0x604   : > { %v1115_v7 = vpop.permute.xlu1 %1114 }
 0x605   : > { %v1125_v13 = vsel %vm307_vm0, %v1085_v8, %v1115_v7 }
 0x608   : > { %v1119_v10 = vpop.permute.xlu0 %1118 }
 0x609   : > { %v1127_v14 = vsel %vm1126_vm3, %v1125_v13, %v1119_v10 }
 0x60c   : > { %v1123_v0 = vpop.permute.xlu1 %1122 }
 0x60d   : > { %v1129_v15 = vsel %vm1128_vm4, %v1127_v14, %v1123_v0 }
 0x60e   : > { %1131 = vst.msk [vmem:[%s293_s28] sm:$0xff] %vm1130_vm5, %v1129_v15 }
 0x60f   : > { %1573 = shalt.err (!%p1570_p13)
}
 0x610   : > { %s1574_s21 = scalar_lea.hbm %s1998_s5, 128  ;;  %s1578_s19 = scalar_lea.hbm %s2050_s3, 256 }
 0x611   : > { %p1575_p11 = scmp.ne.s32.totalorder %s1998_s5, %s1574_s21  ;;  %p1579_p7 = scmp.lt.u32.totalorder %s1998_s5, %s2050_s3 }
 0x612   : > { %p1580_p3 = scmp.lt.u32.totalorder %s1578_s19, %s1574_s21  ;;  %p1582_p4 = scmp.lt.u32.totalorder %s1574_s21, %s1998_s5 }
 0x613   : > { %p1576_p2 = pnand %p1575_p11, %p2073_p10 }
 0x614   : > { %p1581_p0 = por %p1580_p3, %p1579_p7 }
 0x615   : > { %p1577_p5 = pneg %p1576_p2 }
 0x616   : > { %p1583_p12 = por %p1582_p4, %p1581_p0 }
 0x618   : > { %p1584_p1 = pnand %p1583_p12, %p1577_p5 }
 0x61a   : > { %1587 = shalt.err (!%p1584_p1)
}
 0x61b   : > { %1368 = dma.vmem_to_hbm [thread:$0]  (%p2073_p10), %s2000_s30, 128, %s1998_s5, %s1133_s15  }
 0x61c PF: > { %s1159_s7 = sand.u32 1, %s1626_s12   ;;  %p2074_p8 = scmp.ne.s32.totalorder %s2063_s27, 0 }
 0x61d   : > { %p2075_p9 = scmp.ge.s32.totalorder %s1646_s17, 2  ;;  %s1160_s20 = scalar_lea.sflag [#allocation7], %s1159_s7 }
 0x61f   : > { %p1381_p6 = pnand %p2075_p9, %p2074_p8 }
 0x621   : > { %1621 = dma.done.wait (!%p1381_p6), %s1160_s20, 128  }
 0x622   : > { %1623 = vsyncadd (!%p1381_p6), %s1160_s20, 4294967168  ;;  %s22_s17 = sadd.s32 1, %s1646_s17   ;;  %s2076_s25 = sld [smem:[#allocation17_spill]] }
 0x623   : > { %p19_p13 = scmp.ge.s32.totalorder %s22_s17, 4   ;;  %s2077_s15 = sld [smem:[#allocation15_spill]] }
 0x624   : > { %s2078_s16 = sld [smem:[#allocation16_spill]]  ;;  %s2079_s12 = smov %s1630_s13 }
 0x625   : > { %s2080_s13 = smov %s1634_s14  ;;  %21 = sbr.rel (!%p19_p13) target bundleno = 10 (0xa), region = 118 }
 0x628   : > { %s2081_s14 = smov %s2076_s25 }
 0x62c   :  { %1165 = vsyncpa [#allocation6], 1 }
 0x62d   :  { %1167 = vsyncpa [#allocation6 + $0x1], 1 }
 0x62e   :  { %1168 = vsyncpa [#allocation9], 1 }
 0x62f   :  { %1170 = vsyncpa [#allocation9 + $0x1], 1 }
 0x630   :  { %1171 = vsyncpa [#allocation7], 1 }
 0x631   :  { %1173 = vsyncpa [#allocation7 + $0x1], 1 }

</bundles_post_ra>
